<compile_context>
chip_gen: v7x
topology: tpu7x:2x2x1
jax: 0.10.0
libtpu: 0.0.40
codegen_flags: <defaults>
</compile_context>

<pallas_src>
import functools

import numpy as np
import jax
import jax.numpy as jnp
from jax import lax
from jax.experimental import pallas as pl
from jax.experimental.pallas import tpu as pltpu


def _round_up(x, m):
    return ((x + m - 1) // m) * m


def _skipgram_tile_kernel(
    # scalar-prefetch (SMEM) int32 index arrays
    inputs_sref, contexts_sref, negatives_sref,
    # embedding tables, left in HBM (memory_space=pl.ANY)
    in_emb_hbm, out_emb_hbm,
    # output: (1, 8, 128) f32 lane-dense per-tile partial loss
    o_ref,
    # scratch: VMEM gather buffers + DMA semaphores
    in_buf, pos_buf, neg_buf, sems,
    *, tile_b, num_neg, n_valid):
    pid = pl.program_id(0)
    base = pid * tile_b

    # ---- fused gather: one row DMA per (input, context, negative) row of this tile ----
    @pl.loop(0, tile_b)
    def _issue(r):
        row = base + r
        pltpu.make_async_copy(
            in_emb_hbm.at[inputs_sref[row]], in_buf.at[r], sems.at[0]).start()
        pltpu.make_async_copy(
            out_emb_hbm.at[contexts_sref[row]], pos_buf.at[r], sems.at[1]).start()
        for k in range(num_neg):                       # static unroll over K
            n_idx = negatives_sref[row * num_neg + k]
            pltpu.make_async_copy(
                out_emb_hbm.at[n_idx], neg_buf.at[k * tile_b + r], sems.at[2]).start()

    # ---- wait for every row DMA of this tile (one wait per start on each stream sem) ---
    @pl.loop(0, tile_b)
    def _wait(r):
        pltpu.make_async_copy(in_emb_hbm.at[0], in_buf.at[r], sems.at[0]).wait()
        pltpu.make_async_copy(out_emb_hbm.at[0], pos_buf.at[r], sems.at[1]).wait()
        for k in range(num_neg):
            pltpu.make_async_copy(
                out_emb_hbm.at[0], neg_buf.at[k * tile_b + r], sems.at[2]).wait()

    # ---- compute (VPU only; reductions over the lane-dense padded embedding dim) -------
    in_v = in_buf[...]                      # (tile_b, Dp) f32
    pos_v = pos_buf[...]                    # (tile_b, Dp) f32

    row_ids = base + lax.broadcasted_iota(jnp.int32, (tile_b, 1), 0)
    valid = row_ids < n_valid               # mask padded batch rows

    def log_sigmoid(x):
        # numerically stable log(sigmoid(x)) = min(x, 0) - log1p(exp(-|x|))
        return jnp.minimum(x, 0.0) - jnp.log1p(jnp.exp(-jnp.abs(x)))

    pos_score = jnp.sum(in_v * pos_v, axis=-1, keepdims=True)                   # (tile_b, 1)
    acc = jnp.sum(jnp.where(valid, log_sigmoid(pos_score), 0.0), keepdims=True)  # (1, 1)

    # Negatives: never materialise a (tile_b, K, D) intermediate — one k-slice at a time.
    for k in range(num_neg):
        neg_k = neg_buf[pl.ds(k * tile_b, tile_b), :]                            # (tile_b, Dp)
        neg_score = jnp.sum(in_v * neg_k, axis=-1, keepdims=True)                # (tile_b, 1)
        acc = acc + jnp.sum(jnp.where(valid, log_sigmoid(-neg_score), 0.0), keepdims=True)

    # Lane-dense (8,128) store of the per-tile partial sum; combined in the wrapper.
    o_ref[...] = jnp.broadcast_to(acc.reshape(1, 1, 1), (1, 8, 128))


def skipgram_neg_loss(in_emb, out_emb, inputs, contexts, negatives, *, tile_b=8):
    """NEG forward loss.  in_emb/out_emb: (V, D) f32, inputs/contexts: (B,) int32,
    negatives: (B, K) int32.  Returns the scalar loss of SkipGram.forward."""
    B = int(inputs.shape[0])
    K = int(negatives.shape[1])
    _, D = in_emb.shape

    tile_b = max(8, _round_up(min(int(tile_b), _round_up(B, 8)), 8))
    Dp = _round_up(D, 128)                  # lane-dense embedding dim (zero padding)
    Bp = _round_up(B, tile_b)
    num_tiles = Bp // tile_b

    if Dp != D:                             # zero padding keeps all dot products identical
        in_emb = jnp.pad(in_emb, ((0, 0), (0, Dp - D)))
        out_emb = jnp.pad(out_emb, ((0, 0), (0, Dp - D)))

    pad = Bp - B
    inputs_p = jnp.pad(inputs.astype(jnp.int32), (0, pad))
    contexts_p = jnp.pad(contexts.astype(jnp.int32), (0, pad))
    # Flatten negatives to 1-D for SMEM (2-D [R, small-C] SMEM arrays pad badly).
    neg_flat = jnp.pad(negatives.astype(jnp.int32), ((0, pad), (0, 0))).reshape(-1)

    kernel = functools.partial(_skipgram_tile_kernel,
                               tile_b=tile_b, num_neg=K, n_valid=B)

    partials = pl.pallas_call(
        kernel,
        out_shape=jax.ShapeDtypeStruct((num_tiles, 8, 128), jnp.float32),
        grid_spec=pltpu.PrefetchScalarGridSpec(
            num_scalar_prefetch=3,
            grid=(num_tiles,),
            in_specs=[
                pl.BlockSpec(memory_space=pl.ANY),    # in_embeddings table stays in HBM
                pl.BlockSpec(memory_space=pl.ANY),    # out_embeddings table stays in HBM
            ],
            out_specs=pl.BlockSpec((1, 8, 128), lambda i, *_: (i, 0, 0)),
            scratch_shapes=[
                pltpu.VMEM((tile_b, Dp), jnp.float32),       # gathered input vectors
                pltpu.VMEM((tile_b, Dp), jnp.float32),       # gathered positive contexts
                pltpu.VMEM((tile_b * K, Dp), jnp.float32),   # gathered negatives (k-major)
                pltpu.SemaphoreType.DMA((3,)),               # one sem per gather stream
            ],
        ),
        compiler_params=pltpu.CompilerParams(
            dimension_semantics=("parallel",),   # batch tiles are independent -> megacore
            vmem_limit_bytes=32 * 1024 * 1024,
        ),
    )(inputs_p, contexts_p, neg_flat, in_emb, out_emb)

    # Tiny final combine in the wrapper keeps the batch grid axis fully parallel.
    return -jnp.sum(partials[:, 0, 0]) / B


def init_negative_table(frequency, negative_alpha, table_size):
    # Mirrors NEG.init_negative_table (scaled-down table size for this synthetic run).
    z = np.sum(np.power(frequency, negative_alpha))
    negative_table = np.zeros(table_size, dtype=np.int32)
    begin_index = 0
    for word_id, freq in enumerate(frequency):
        c = np.power(freq, negative_alpha)
        end_index = begin_index + int(c * table_size / z) + 1
        negative_table[begin_index:end_index] = word_id
        begin_index = end_index
    return negative_table


if __name__ == "__main__":
    num_vocab = 64
    embedding_dim = 100        # module default; padded to 128 lanes inside the wrapper
    batch = 16
    num_negatives = 10
    noise_param = 0.75
    TABLE_SIZE = 100_000       # stand-in for NEGATIVE_TABLE_SIZE = 10_000_000

    key = jax.random.PRNGKey(0)
    k_in, k_out, k_inputs, k_ctx = jax.random.split(key, 4)
    upper = 0.5 / embedding_dim
    in_emb = jax.random.uniform(k_in, (num_vocab, embedding_dim),
                                minval=-upper, maxval=upper, dtype=jnp.float32)
    # The module zero-inits out_embeddings; small random values are used here so the
    # correctness check actually exercises the fused gather (a zero table would make any
    # gather look "correct").  Forward semantics are unchanged (weights are just inputs).
    out_emb = jax.random.uniform(k_out, (num_vocab, embedding_dim),
                                 minval=-upper, maxval=upper, dtype=jnp.float32)

    # Synthetic Zipf-like corpus frequencies + NEG noise table (host-side numpy).
    id2freq = np.array([1000.0 / (i + 1) for i in range(num_vocab)], dtype=np.float64)
    negative_table = init_negative_table(id2freq, noise_param, TABLE_SIZE)

    inputs = jax.random.randint(k_inputs, (batch,), 0, num_vocab, dtype=jnp.int32)
    contexts = jax.random.randint(k_ctx, (batch,), 0, num_vocab, dtype=jnp.int32)

    # TODO(synk): NEG.sample_negatives' np.random.RandomState(7) noise-table lookup is
    # host-side RNG with no Pallas equivalent; kept as numpy glue exactly as the module.
    rnd = np.random.RandomState(7)
    negatives = jnp.asarray(
        negative_table[rnd.randint(low=0, high=TABLE_SIZE, size=(batch, num_negatives))],
        dtype=jnp.int32,
    )

    loss = skipgram_neg_loss(in_emb, out_emb, inputs, contexts, negatives, tile_b=8)
    loss = jax.block_until_ready(loss)

    # Pure-JAX reference of the NEG forward semantics.
    def ref_loss(in_emb, out_emb, inputs, contexts, negatives):
        iv = in_emb[inputs]
        pv = out_emb[contexts]
        nv = out_emb[negatives]
        ls = jax.nn.log_sigmoid
        l = jnp.sum(ls(jnp.sum(iv * pv, -1))) + jnp.sum(ls(-jnp.sum(iv[:, None, :] * nv, -1)))
        return -l / contexts.shape[0]

    expected = ref_loss(in_emb, out_emb, inputs, contexts, negatives)
    np.testing.assert_allclose(np.asarray(loss), np.asarray(expected), rtol=1e-5, atol=1e-5)
    print("KERNEL_OK")
</pallas_src>

<mosaic_0001>
module attributes {stable_mosaic.version = 11 : i64} {
  func.func @_skipgram_tile_kernel(%arg0: i32, %arg1: memref<16xi32, #tpu.memory_space<smem>>, %arg2: memref<16xi32, #tpu.memory_space<smem>>, %arg3: memref<160xi32, #tpu.memory_space<smem>>, %arg4: memref<64x128xf32, #tpu.memory_space<any>>, %arg5: memref<64x128xf32, #tpu.memory_space<any>>, %arg6: memref<1x8x128xf32, #tpu.memory_space<vmem>>, %arg7: memref<8x128xf32, #tpu.memory_space<vmem>>, %arg8: memref<8x128xf32, #tpu.memory_space<vmem>>, %arg9: memref<80x128xf32, #tpu.memory_space<vmem>>, %arg10: memref<3x!tpu.dma_semaphore, #tpu.memory_space<semaphore_mem>>) attributes {dimension_semantics = [#tpu.dimension_semantics<parallel>], iteration_bounds = array<i64: 2>, scalar_prefetch = 3 : i64, scratch_operands = 4 : i64, tpu.core_type = #tpu.core_type<tc>, window_params = [{}, {}, {transform_indices = @transform_2, window_bounds = array<i64: 1, 8, 128>}]} {
    %c8_i32 = arith.constant 8 : i32
    %0 = arith.muli %arg0, %c8_i32 : i32
    %c0_i32 = arith.constant 0 : i32
    %c8_i32_0 = arith.constant 8 : i32
    %1 = arith.addi %c0_i32, %c8_i32_0 : i32
    %c1_i32 = arith.constant 1 : i32
    scf.for %arg11 = %c0_i32 to %1 step %c1_i32  : i32 {
      %c1_i32_87 = arith.constant 1 : i32
      %252 = arith.muli %arg11, %c1_i32_87 : i32
      %c0_i32_88 = arith.constant 0 : i32
      %253 = arith.addi %c0_i32_88, %252 : i32
      %254 = arith.addi %0, %253 : i32
      %255 = arith.index_cast %254 : i32 to index
      %256 = memref.load %arg1[%255] : memref<16xi32, #tpu.memory_space<smem>>
      %c0_i32_89 = arith.constant 0 : i32
      %c0_i32_90 = arith.constant 0 : i32
      %257 = tpu.memref_slice %arg4[%256, %c0_i32_90] : memref<64x128xf32, #tpu.memory_space<any>> -> memref<1x128xf32, #tpu.memory_space<any>>
      %258 = tpu.memref_squeeze %257 : memref<1x128xf32, #tpu.memory_space<any>> -> memref<128xf32, #tpu.memory_space<any>>
      %c0_i32_91 = arith.constant 0 : i32
      %259 = tpu.memref_slice %arg7[%253, %c0_i32_91] : memref<8x128xf32, #tpu.memory_space<vmem>> -> memref<1x128xf32, #tpu.memory_space<vmem>>
      %260 = tpu.memref_squeeze %259 : memref<1x128xf32, #tpu.memory_space<vmem>> -> memref<128xf32, #tpu.memory_space<vmem>>
      %261 = tpu.memref_slice %arg10[%c0_i32_89] : memref<3x!tpu.dma_semaphore, #tpu.memory_space<semaphore_mem>> -> memref<1x!tpu.dma_semaphore, #tpu.memory_space<semaphore_mem>>
      %262 = tpu.memref_squeeze %261 : memref<1x!tpu.dma_semaphore, #tpu.memory_space<semaphore_mem>> -> memref<!tpu.dma_semaphore, #tpu.memory_space<semaphore_mem>>
      tpu.enqueue_dma source(%258 : memref<128xf32, #tpu.memory_space<any>>) target(%260 : memref<128xf32, #tpu.memory_space<vmem>>) target_semaphore(%262 : memref<!tpu.dma_semaphore, #tpu.memory_space<semaphore_mem>>)
      %263 = arith.index_cast %254 : i32 to index
      %264 = memref.load %arg2[%263] : memref<16xi32, #tpu.memory_space<smem>>
      %c1_i32_92 = arith.constant 1 : i32
      %c0_i32_93 = arith.constant 0 : i32
      %265 = tpu.memref_slice %arg5[%264, %c0_i32_93] : memref<64x128xf32, #tpu.memory_space<any>> -> memref<1x128xf32, #tpu.memory_space<any>>
      %266 = tpu.memref_squeeze %265 : memref<1x128xf32, #tpu.memory_space<any>> -> memref<128xf32, #tpu.memory_space<any>>
      %c0_i32_94 = arith.constant 0 : i32
      %267 = tpu.memref_slice %arg8[%253, %c0_i32_94] : memref<8x128xf32, #tpu.memory_space<vmem>> -> memref<1x128xf32, #tpu.memory_space<vmem>>
      %268 = tpu.memref_squeeze %267 : memref<1x128xf32, #tpu.memory_space<vmem>> -> memref<128xf32, #tpu.memory_space<vmem>>
      %269 = tpu.memref_slice %arg10[%c1_i32_92] : memref<3x!tpu.dma_semaphore, #tpu.memory_space<semaphore_mem>> -> memref<1x!tpu.dma_semaphore, #tpu.memory_space<semaphore_mem>>
      %270 = tpu.memref_squeeze %269 : memref<1x!tpu.dma_semaphore, #tpu.memory_space<semaphore_mem>> -> memref<!tpu.dma_semaphore, #tpu.memory_space<semaphore_mem>>
      tpu.enqueue_dma source(%266 : memref<128xf32, #tpu.memory_space<any>>) target(%268 : memref<128xf32, #tpu.memory_space<vmem>>) target_semaphore(%270 : memref<!tpu.dma_semaphore, #tpu.memory_space<semaphore_mem>>)
      %c10_i32 = arith.constant 10 : i32
      %271 = arith.muli %254, %c10_i32 : i32
      %c0_i32_95 = arith.constant 0 : i32
      %272 = arith.addi %271, %c0_i32_95 : i32
      %273 = arith.index_cast %272 : i32 to index
      %274 = memref.load %arg3[%273] : memref<160xi32, #tpu.memory_space<smem>>
      %c0_i32_96 = arith.constant 0 : i32
      %275 = arith.addi %c0_i32_96, %253 : i32
      %c2_i32 = arith.constant 2 : i32
      %c0_i32_97 = arith.constant 0 : i32
      %276 = tpu.memref_slice %arg5[%274, %c0_i32_97] : memref<64x128xf32, #tpu.memory_space<any>> -> memref<1x128xf32, #tpu.memory_space<any>>
      %277 = tpu.memref_squeeze %276 : memref<1x128xf32, #tpu.memory_space<any>> -> memref<128xf32, #tpu.memory_space<any>>
      %c0_i32_98 = arith.constant 0 : i32
      %278 = tpu.memref_slice %arg9[%275, %c0_i32_98] : memref<80x128xf32, #tpu.memory_space<vmem>> -> memref<1x128xf32, #tpu.memory_space<vmem>>
      %279 = tpu.memref_squeeze %278 : memref<1x128xf32, #tpu.memory_space<vmem>> -> memref<128xf32, #tpu.memory_space<vmem>>
      %280 = tpu.memref_slice %arg10[%c2_i32] : memref<3x!tpu.dma_semaphore, #tpu.memory_space<semaphore_mem>> -> memref<1x!tpu.dma_semaphore, #tpu.memory_space<semaphore_mem>>
      %281 = tpu.memref_squeeze %280 : memref<1x!tpu.dma_semaphore, #tpu.memory_space<semaphore_mem>> -> memref<!tpu.dma_semaphore, #tpu.memory_space<semaphore_mem>>
      tpu.enqueue_dma source(%277 : memref<128xf32, #tpu.memory_space<any>>) target(%279 : memref<128xf32, #tpu.memory_space<vmem>>) target_semaphore(%281 : memref<!tpu.dma_semaphore, #tpu.memory_space<semaphore_mem>>)
      %c10_i32_99 = arith.constant 10 : i32
      %282 = arith.muli %254, %c10_i32_99 : i32
      %c1_i32_100 = arith.constant 1 : i32
      %283 = arith.addi %282, %c1_i32_100 : i32
      %284 = arith.index_cast %283 : i32 to index
      %285 = memref.load %arg3[%284] : memref<160xi32, #tpu.memory_space<smem>>
      %c8_i32_101 = arith.constant 8 : i32
      %286 = arith.addi %c8_i32_101, %253 : i32
      %c2_i32_102 = arith.constant 2 : i32
      %c0_i32_103 = arith.constant 0 : i32
      %287 = tpu.memref_slice %arg5[%285, %c0_i32_103] : memref<64x128xf32, #tpu.memory_space<any>> -> memref<1x128xf32, #tpu.memory_space<any>>
      %288 = tpu.memref_squeeze %287 : memref<1x128xf32, #tpu.memory_space<any>> -> memref<128xf32, #tpu.memory_space<any>>
      %c0_i32_104 = arith.constant 0 : i32
      %289 = tpu.memref_slice %arg9[%286, %c0_i32_104] : memref<80x128xf32, #tpu.memory_space<vmem>> -> memref<1x128xf32, #tpu.memory_space<vmem>>
      %290 = tpu.memref_squeeze %289 : memref<1x128xf32, #tpu.memory_space<vmem>> -> memref<128xf32, #tpu.memory_space<vmem>>
      %291 = tpu.memref_slice %arg10[%c2_i32_102] : memref<3x!tpu.dma_semaphore, #tpu.memory_space<semaphore_mem>> -> memref<1x!tpu.dma_semaphore, #tpu.memory_space<semaphore_mem>>
      %292 = tpu.memref_squeeze %291 : memref<1x!tpu.dma_semaphore, #tpu.memory_space<semaphore_mem>> -> memref<!tpu.dma_semaphore, #tpu.memory_space<semaphore_mem>>
      tpu.enqueue_dma source(%288 : memref<128xf32, #tpu.memory_space<any>>) target(%290 : memref<128xf32, #tpu.memory_space<vmem>>) target_semaphore(%292 : memref<!tpu.dma_semaphore, #tpu.memory_space<semaphore_mem>>)
      %c10_i32_105 = arith.constant 10 : i32
      %293 = arith.muli %254, %c10_i32_105 : i32
      %c2_i32_106 = arith.constant 2 : i32
      %294 = arith.addi %293, %c2_i32_106 : i32
      %295 = arith.index_cast %294 : i32 to index
      %296 = memref.load %arg3[%295] : memref<160xi32, #tpu.memory_space<smem>>
      %c16_i32_107 = arith.constant 16 : i32
      %297 = arith.addi %c16_i32_107, %253 : i32
      %c2_i32_108 = arith.constant 2 : i32
      %c0_i32_109 = arith.constant 0 : i32
      %298 = tpu.memref_slice %arg5[%296, %c0_i32_109] : memref<64x128xf32, #tpu.memory_space<any>> -> memref<1x128xf32, #tpu.memory_space<any>>
      %299 = tpu.memref_squeeze %298 : memref<1x128xf32, #tpu.memory_space<any>> -> memref<128xf32, #tpu.memory_space<any>>
      %c0_i32_110 = arith.constant 0 : i32
      %300 = tpu.memref_slice %arg9[%297, %c0_i32_110] : memref<80x128xf32, #tpu.memory_space<vmem>> -> memref<1x128xf32, #tpu.memory_space<vmem>>
      %301 = tpu.memref_squeeze %300 : memref<1x128xf32, #tpu.memory_space<vmem>> -> memref<128xf32, #tpu.memory_space<vmem>>
      %302 = tpu.memref_slice %arg10[%c2_i32_108] : memref<3x!tpu.dma_semaphore, #tpu.memory_space<semaphore_mem>> -> memref<1x!tpu.dma_semaphore, #tpu.memory_space<semaphore_mem>>
      %303 = tpu.memref_squeeze %302 : memref<1x!tpu.dma_semaphore, #tpu.memory_space<semaphore_mem>> -> memref<!tpu.dma_semaphore, #tpu.memory_space<semaphore_mem>>
      tpu.enqueue_dma source(%299 : memref<128xf32, #tpu.memory_space<any>>) target(%301 : memref<128xf32, #tpu.memory_space<vmem>>) target_semaphore(%303 : memref<!tpu.dma_semaphore, #tpu.memory_space<semaphore_mem>>)
      %c10_i32_111 = arith.constant 10 : i32
      %304 = arith.muli %254, %c10_i32_111 : i32
      %c3_i32 = arith.constant 3 : i32
      %305 = arith.addi %304, %c3_i32 : i32
      %306 = arith.index_cast %305 : i32 to index
      %307 = memref.load %arg3[%306] : memref<160xi32, #tpu.memory_space<smem>>
      %c24_i32 = arith.constant 24 : i32
      %308 = arith.addi %c24_i32, %253 : i32
      %c2_i32_112 = arith.constant 2 : i32
      %c0_i32_113 = arith.constant 0 : i32
      %309 = tpu.memref_slice %arg5[%307, %c0_i32_113] : memref<64x128xf32, #tpu.memory_space<any>> -> memref<1x128xf32, #tpu.memory_space<any>>
      %310 = tpu.memref_squeeze %309 : memref<1x128xf32, #tpu.memory_space<any>> -> memref<128xf32, #tpu.memory_space<any>>
      %c0_i32_114 = arith.constant 0 : i32
      %311 = tpu.memref_slice %arg9[%308, %c0_i32_114] : memref<80x128xf32, #tpu.memory_space<vmem>> -> memref<1x128xf32, #tpu.memory_space<vmem>>
      %312 = tpu.memref_squeeze %311 : memref<1x128xf32, #tpu.memory_space<vmem>> -> memref<128xf32, #tpu.memory_space<vmem>>
      %313 = tpu.memref_slice %arg10[%c2_i32_112] : memref<3x!tpu.dma_semaphore, #tpu.memory_space<semaphore_mem>> -> memref<1x!tpu.dma_semaphore, #tpu.memory_space<semaphore_mem>>
      %314 = tpu.memref_squeeze %313 : memref<1x!tpu.dma_semaphore, #tpu.memory_space<semaphore_mem>> -> memref<!tpu.dma_semaphore, #tpu.memory_space<semaphore_mem>>
      tpu.enqueue_dma source(%310 : memref<128xf32, #tpu.memory_space<any>>) target(%312 : memref<128xf32, #tpu.memory_space<vmem>>) target_semaphore(%314 : memref<!tpu.dma_semaphore, #tpu.memory_space<semaphore_mem>>)
      %c10_i32_115 = arith.constant 10 : i32
      %315 = arith.muli %254, %c10_i32_115 : i32
      %c4_i32 = arith.constant 4 : i32
      %316 = arith.addi %315, %c4_i32 : i32
      %317 = arith.index_cast %316 : i32 to index
      %318 = memref.load %arg3[%317] : memref<160xi32, #tpu.memory_space<smem>>
      %c32_i32 = arith.constant 32 : i32
      %319 = arith.addi %c32_i32, %253 : i32
      %c2_i32_116 = arith.constant 2 : i32
      %c0_i32_117 = arith.constant 0 : i32
      %320 = tpu.memref_slice %arg5[%318, %c0_i32_117] : memref<64x128xf32, #tpu.memory_space<any>> -> memref<1x128xf32, #tpu.memory_space<any>>
      %321 = tpu.memref_squeeze %320 : memref<1x128xf32, #tpu.memory_space<any>> -> memref<128xf32, #tpu.memory_space<any>>
      %c0_i32_118 = arith.constant 0 : i32
      %322 = tpu.memref_slice %arg9[%319, %c0_i32_118] : memref<80x128xf32, #tpu.memory_space<vmem>> -> memref<1x128xf32, #tpu.memory_space<vmem>>
      %323 = tpu.memref_squeeze %322 : memref<1x128xf32, #tpu.memory_space<vmem>> -> memref<128xf32, #tpu.memory_space<vmem>>
      %324 = tpu.memref_slice %arg10[%c2_i32_116] : memref<3x!tpu.dma_semaphore, #tpu.memory_space<semaphore_mem>> -> memref<1x!tpu.dma_semaphore, #tpu.memory_space<semaphore_mem>>
      %325 = tpu.memref_squeeze %324 : memref<1x!tpu.dma_semaphore, #tpu.memory_space<semaphore_mem>> -> memref<!tpu.dma_semaphore, #tpu.memory_space<semaphore_mem>>
      tpu.enqueue_dma source(%321 : memref<128xf32, #tpu.memory_space<any>>) target(%323 : memref<128xf32, #tpu.memory_space<vmem>>) target_semaphore(%325 : memref<!tpu.dma_semaphore, #tpu.memory_space<semaphore_mem>>)
      %c10_i32_119 = arith.constant 10 : i32
      %326 = arith.muli %254, %c10_i32_119 : i32
      %c5_i32 = arith.constant 5 : i32
      %327 = arith.addi %326, %c5_i32 : i32
      %328 = arith.index_cast %327 : i32 to index
      %329 = memref.load %arg3[%328] : memref<160xi32, #tpu.memory_space<smem>>
      %c40_i32 = arith.constant 40 : i32
      %330 = arith.addi %c40_i32, %253 : i32
      %c2_i32_120 = arith.constant 2 : i32
      %c0_i32_121 = arith.constant 0 : i32
      %331 = tpu.memref_slice %arg5[%329, %c0_i32_121] : memref<64x128xf32, #tpu.memory_space<any>> -> memref<1x128xf32, #tpu.memory_space<any>>
      %332 = tpu.memref_squeeze %331 : memref<1x128xf32, #tpu.memory_space<any>> -> memref<128xf32, #tpu.memory_space<any>>
      %c0_i32_122 = arith.constant 0 : i32
      %333 = tpu.memref_slice %arg9[%330, %c0_i32_122] : memref<80x128xf32, #tpu.memory_space<vmem>> -> memref<1x128xf32, #tpu.memory_space<vmem>>
      %334 = tpu.memref_squeeze %333 : memref<1x128xf32, #tpu.memory_space<vmem>> -> memref<128xf32, #tpu.memory_space<vmem>>
      %335 = tpu.memref_slice %arg10[%c2_i32_120] : memref<3x!tpu.dma_semaphore, #tpu.memory_space<semaphore_mem>> -> memref<1x!tpu.dma_semaphore, #tpu.memory_space<semaphore_mem>>
      %336 = tpu.memref_squeeze %335 : memref<1x!tpu.dma_semaphore, #tpu.memory_space<semaphore_mem>> -> memref<!tpu.dma_semaphore, #tpu.memory_space<semaphore_mem>>
      tpu.enqueue_dma source(%332 : memref<128xf32, #tpu.memory_space<any>>) target(%334 : memref<128xf32, #tpu.memory_space<vmem>>) target_semaphore(%336 : memref<!tpu.dma_semaphore, #tpu.memory_space<semaphore_mem>>)
      %c10_i32_123 = arith.constant 10 : i32
      %337 = arith.muli %254, %c10_i32_123 : i32
      %c6_i32 = arith.constant 6 : i32
      %338 = arith.addi %337, %c6_i32 : i32
      %339 = arith.index_cast %338 : i32 to index
      %340 = memref.load %arg3[%339] : memref<160xi32, #tpu.memory_space<smem>>
      %c48_i32 = arith.constant 48 : i32
      %341 = arith.addi %c48_i32, %253 : i32
      %c2_i32_124 = arith.constant 2 : i32
      %c0_i32_125 = arith.constant 0 : i32
      %342 = tpu.memref_slice %arg5[%340, %c0_i32_125] : memref<64x128xf32, #tpu.memory_space<any>> -> memref<1x128xf32, #tpu.memory_space<any>>
      %343 = tpu.memref_squeeze %342 : memref<1x128xf32, #tpu.memory_space<any>> -> memref<128xf32, #tpu.memory_space<any>>
      %c0_i32_126 = arith.constant 0 : i32
      %344 = tpu.memref_slice %arg9[%341, %c0_i32_126] : memref<80x128xf32, #tpu.memory_space<vmem>> -> memref<1x128xf32, #tpu.memory_space<vmem>>
      %345 = tpu.memref_squeeze %344 : memref<1x128xf32, #tpu.memory_space<vmem>> -> memref<128xf32, #tpu.memory_space<vmem>>
      %346 = tpu.memref_slice %arg10[%c2_i32_124] : memref<3x!tpu.dma_semaphore, #tpu.memory_space<semaphore_mem>> -> memref<1x!tpu.dma_semaphore, #tpu.memory_space<semaphore_mem>>
      %347 = tpu.memref_squeeze %346 : memref<1x!tpu.dma_semaphore, #tpu.memory_space<semaphore_mem>> -> memref<!tpu.dma_semaphore, #tpu.memory_space<semaphore_mem>>
      tpu.enqueue_dma source(%343 : memref<128xf32, #tpu.memory_space<any>>) target(%345 : memref<128xf32, #tpu.memory_space<vmem>>) target_semaphore(%347 : memref<!tpu.dma_semaphore, #tpu.memory_space<semaphore_mem>>)
      %c10_i32_127 = arith.constant 10 : i32
      %348 = arith.muli %254, %c10_i32_127 : i32
      %c7_i32 = arith.constant 7 : i32
      %349 = arith.addi %348, %c7_i32 : i32
      %350 = arith.index_cast %349 : i32 to index
      %351 = memref.load %arg3[%350] : memref<160xi32, #tpu.memory_space<smem>>
      %c56_i32 = arith.constant 56 : i32
      %352 = arith.addi %c56_i32, %253 : i32
      %c2_i32_128 = arith.constant 2 : i32
      %c0_i32_129 = arith.constant 0 : i32
      %353 = tpu.memref_slice %arg5[%351, %c0_i32_129] : memref<64x128xf32, #tpu.memory_space<any>> -> memref<1x128xf32, #tpu.memory_space<any>>
      %354 = tpu.memref_squeeze %353 : memref<1x128xf32, #tpu.memory_space<any>> -> memref<128xf32, #tpu.memory_space<any>>
      %c0_i32_130 = arith.constant 0 : i32
      %355 = tpu.memref_slice %arg9[%352, %c0_i32_130] : memref<80x128xf32, #tpu.memory_space<vmem>> -> memref<1x128xf32, #tpu.memory_space<vmem>>
      %356 = tpu.memref_squeeze %355 : memref<1x128xf32, #tpu.memory_space<vmem>> -> memref<128xf32, #tpu.memory_space<vmem>>
      %357 = tpu.memref_slice %arg10[%c2_i32_128] : memref<3x!tpu.dma_semaphore, #tpu.memory_space<semaphore_mem>> -> memref<1x!tpu.dma_semaphore, #tpu.memory_space<semaphore_mem>>
      %358 = tpu.memref_squeeze %357 : memref<1x!tpu.dma_semaphore, #tpu.memory_space<semaphore_mem>> -> memref<!tpu.dma_semaphore, #tpu.memory_space<semaphore_mem>>
      tpu.enqueue_dma source(%354 : memref<128xf32, #tpu.memory_space<any>>) target(%356 : memref<128xf32, #tpu.memory_space<vmem>>) target_semaphore(%358 : memref<!tpu.dma_semaphore, #tpu.memory_space<semaphore_mem>>)
      %c10_i32_131 = arith.constant 10 : i32
      %359 = arith.muli %254, %c10_i32_131 : i32
      %c8_i32_132 = arith.constant 8 : i32
      %360 = arith.addi %359, %c8_i32_132 : i32
      %361 = arith.index_cast %360 : i32 to index
      %362 = memref.load %arg3[%361] : memref<160xi32, #tpu.memory_space<smem>>
      %c64_i32 = arith.constant 64 : i32
      %363 = arith.addi %c64_i32, %253 : i32
      %c2_i32_133 = arith.constant 2 : i32
      %c0_i32_134 = arith.constant 0 : i32
      %364 = tpu.memref_slice %arg5[%362, %c0_i32_134] : memref<64x128xf32, #tpu.memory_space<any>> -> memref<1x128xf32, #tpu.memory_space<any>>
      %365 = tpu.memref_squeeze %364 : memref<1x128xf32, #tpu.memory_space<any>> -> memref<128xf32, #tpu.memory_space<any>>
      %c0_i32_135 = arith.constant 0 : i32
      %366 = tpu.memref_slice %arg9[%363, %c0_i32_135] : memref<80x128xf32, #tpu.memory_space<vmem>> -> memref<1x128xf32, #tpu.memory_space<vmem>>
      %367 = tpu.memref_squeeze %366 : memref<1x128xf32, #tpu.memory_space<vmem>> -> memref<128xf32, #tpu.memory_space<vmem>>
      %368 = tpu.memref_slice %arg10[%c2_i32_133] : memref<3x!tpu.dma_semaphore, #tpu.memory_space<semaphore_mem>> -> memref<1x!tpu.dma_semaphore, #tpu.memory_space<semaphore_mem>>
      %369 = tpu.memref_squeeze %368 : memref<1x!tpu.dma_semaphore, #tpu.memory_space<semaphore_mem>> -> memref<!tpu.dma_semaphore, #tpu.memory_space<semaphore_mem>>
      tpu.enqueue_dma source(%365 : memref<128xf32, #tpu.memory_space<any>>) target(%367 : memref<128xf32, #tpu.memory_space<vmem>>) target_semaphore(%369 : memref<!tpu.dma_semaphore, #tpu.memory_space<semaphore_mem>>)
      %c10_i32_136 = arith.constant 10 : i32
      %370 = arith.muli %254, %c10_i32_136 : i32
      %c9_i32 = arith.constant 9 : i32
      %371 = arith.addi %370, %c9_i32 : i32
      %372 = arith.index_cast %371 : i32 to index
      %373 = memref.load %arg3[%372] : memref<160xi32, #tpu.memory_space<smem>>
      %c72_i32 = arith.constant 72 : i32
      %374 = arith.addi %c72_i32, %253 : i32
      %c2_i32_137 = arith.constant 2 : i32
      %c0_i32_138 = arith.constant 0 : i32
      %375 = tpu.memref_slice %arg5[%373, %c0_i32_138] : memref<64x128xf32, #tpu.memory_space<any>> -> memref<1x128xf32, #tpu.memory_space<any>>
      %376 = tpu.memref_squeeze %375 : memref<1x128xf32, #tpu.memory_space<any>> -> memref<128xf32, #tpu.memory_space<any>>
      %c0_i32_139 = arith.constant 0 : i32
      %377 = tpu.memref_slice %arg9[%374, %c0_i32_139] : memref<80x128xf32, #tpu.memory_space<vmem>> -> memref<1x128xf32, #tpu.memory_space<vmem>>
      %378 = tpu.memref_squeeze %377 : memref<1x128xf32, #tpu.memory_space<vmem>> -> memref<128xf32, #tpu.memory_space<vmem>>
      %379 = tpu.memref_slice %arg10[%c2_i32_137] : memref<3x!tpu.dma_semaphore, #tpu.memory_space<semaphore_mem>> -> memref<1x!tpu.dma_semaphore, #tpu.memory_space<semaphore_mem>>
      %380 = tpu.memref_squeeze %379 : memref<1x!tpu.dma_semaphore, #tpu.memory_space<semaphore_mem>> -> memref<!tpu.dma_semaphore, #tpu.memory_space<semaphore_mem>>
      tpu.enqueue_dma source(%376 : memref<128xf32, #tpu.memory_space<any>>) target(%378 : memref<128xf32, #tpu.memory_space<vmem>>) target_semaphore(%380 : memref<!tpu.dma_semaphore, #tpu.memory_space<semaphore_mem>>)
    }
    %c8_i32_1 = arith.constant 8 : i32
    %c0_i32_2 = arith.constant 0 : i32
    %c8_i32_3 = arith.constant 8 : i32
    %2 = arith.addi %c0_i32_2, %c8_i32_3 : i32
    %c1_i32_4 = arith.constant 1 : i32
    scf.for %arg11 = %c0_i32_2 to %2 step %c1_i32_4  : i32 {
      %c1_i32_87 = arith.constant 1 : i32
      %252 = arith.muli %arg11, %c1_i32_87 : i32
      %c0_i32_88 = arith.constant 0 : i32
      %253 = arith.addi %c0_i32_88, %252 : i32
      %c0_i32_89 = arith.constant 0 : i32
      %c0_i32_90 = arith.constant 0 : i32
      %c0_i32_91 = arith.constant 0 : i32
      %254 = tpu.memref_slice %arg4[%c0_i32_89, %c0_i32_91] : memref<64x128xf32, #tpu.memory_space<any>> -> memref<1x128xf32, #tpu.memory_space<any>>
      %255 = tpu.memref_squeeze %254 : memref<1x128xf32, #tpu.memory_space<any>> -> memref<128xf32, #tpu.memory_space<any>>
      %c0_i32_92 = arith.constant 0 : i32
      %256 = tpu.memref_slice %arg7[%253, %c0_i32_92] : memref<8x128xf32, #tpu.memory_space<vmem>> -> memref<1x128xf32, #tpu.memory_space<vmem>>
      %257 = tpu.memref_squeeze %256 : memref<1x128xf32, #tpu.memory_space<vmem>> -> memref<128xf32, #tpu.memory_space<vmem>>
      %258 = tpu.memref_slice %arg10[%c0_i32_90] : memref<3x!tpu.dma_semaphore, #tpu.memory_space<semaphore_mem>> -> memref<1x!tpu.dma_semaphore, #tpu.memory_space<semaphore_mem>>
      %259 = tpu.memref_squeeze %258 : memref<1x!tpu.dma_semaphore, #tpu.memory_space<semaphore_mem>> -> memref<!tpu.dma_semaphore, #tpu.memory_space<semaphore_mem>>
      tpu.wait_dma2 semaphore(%259 : memref<!tpu.dma_semaphore, #tpu.memory_space<semaphore_mem>>) src(%255 : memref<128xf32, #tpu.memory_space<any>>) dst(%257 : memref<128xf32, #tpu.memory_space<vmem>>)
      %c0_i32_93 = arith.constant 0 : i32
      %c1_i32_94 = arith.constant 1 : i32
      %c0_i32_95 = arith.constant 0 : i32
      %260 = tpu.memref_slice %arg5[%c0_i32_93, %c0_i32_95] : memref<64x128xf32, #tpu.memory_space<any>> -> memref<1x128xf32, #tpu.memory_space<any>>
      %261 = tpu.memref_squeeze %260 : memref<1x128xf32, #tpu.memory_space<any>> -> memref<128xf32, #tpu.memory_space<any>>
      %c0_i32_96 = arith.constant 0 : i32
      %262 = tpu.memref_slice %arg8[%253, %c0_i32_96] : memref<8x128xf32, #tpu.memory_space<vmem>> -> memref<1x128xf32, #tpu.memory_space<vmem>>
      %263 = tpu.memref_squeeze %262 : memref<1x128xf32, #tpu.memory_space<vmem>> -> memref<128xf32, #tpu.memory_space<vmem>>
      %264 = tpu.memref_slice %arg10[%c1_i32_94] : memref<3x!tpu.dma_semaphore, #tpu.memory_space<semaphore_mem>> -> memref<1x!tpu.dma_semaphore, #tpu.memory_space<semaphore_mem>>
      %265 = tpu.memref_squeeze %264 : memref<1x!tpu.dma_semaphore, #tpu.memory_space<semaphore_mem>> -> memref<!tpu.dma_semaphore, #tpu.memory_space<semaphore_mem>>
      tpu.wait_dma2 semaphore(%265 : memref<!tpu.dma_semaphore, #tpu.memory_space<semaphore_mem>>) src(%261 : memref<128xf32, #tpu.memory_space<any>>) dst(%263 : memref<128xf32, #tpu.memory_space<vmem>>)
      %c0_i32_97 = arith.constant 0 : i32
      %266 = arith.addi %c0_i32_97, %253 : i32
      %c0_i32_98 = arith.constant 0 : i32
      %c2_i32 = arith.constant 2 : i32
      %c0_i32_99 = arith.constant 0 : i32
      %267 = tpu.memref_slice %arg5[%c0_i32_98, %c0_i32_99] : memref<64x128xf32, #tpu.memory_space<any>> -> memref<1x128xf32, #tpu.memory_space<any>>
      %268 = tpu.memref_squeeze %267 : memref<1x128xf32, #tpu.memory_space<any>> -> memref<128xf32, #tpu.memory_space<any>>
      %c0_i32_100 = arith.constant 0 : i32
      %269 = tpu.memref_slice %arg9[%266, %c0_i32_100] : memref<80x128xf32, #tpu.memory_space<vmem>> -> memref<1x128xf32, #tpu.memory_space<vmem>>
      %270 = tpu.memref_squeeze %269 : memref<1x128xf32, #tpu.memory_space<vmem>> -> memref<128xf32, #tpu.memory_space<vmem>>
      %271 = tpu.memref_slice %arg10[%c2_i32] : memref<3x!tpu.dma_semaphore, #tpu.memory_space<semaphore_mem>> -> memref<1x!tpu.dma_semaphore, #tpu.memory_space<semaphore_mem>>
      %272 = tpu.memref_squeeze %271 : memref<1x!tpu.dma_semaphore, #tpu.memory_space<semaphore_mem>> -> memref<!tpu.dma_semaphore, #tpu.memory_space<semaphore_mem>>
      tpu.wait_dma2 semaphore(%272 : memref<!tpu.dma_semaphore, #tpu.memory_space<semaphore_mem>>) src(%268 : memref<128xf32, #tpu.memory_space<any>>) dst(%270 : memref<128xf32, #tpu.memory_space<vmem>>)
      %c8_i32_101 = arith.constant 8 : i32
      %273 = arith.addi %c8_i32_101, %253 : i32
      %c0_i32_102 = arith.constant 0 : i32
      %c2_i32_103 = arith.constant 2 : i32
      %c0_i32_104 = arith.constant 0 : i32
      %274 = tpu.memref_slice %arg5[%c0_i32_102, %c0_i32_104] : memref<64x128xf32, #tpu.memory_space<any>> -> memref<1x128xf32, #tpu.memory_space<any>>
      %275 = tpu.memref_squeeze %274 : memref<1x128xf32, #tpu.memory_space<any>> -> memref<128xf32, #tpu.memory_space<any>>
      %c0_i32_105 = arith.constant 0 : i32
      %276 = tpu.memref_slice %arg9[%273, %c0_i32_105] : memref<80x128xf32, #tpu.memory_space<vmem>> -> memref<1x128xf32, #tpu.memory_space<vmem>>
      %277 = tpu.memref_squeeze %276 : memref<1x128xf32, #tpu.memory_space<vmem>> -> memref<128xf32, #tpu.memory_space<vmem>>
      %278 = tpu.memref_slice %arg10[%c2_i32_103] : memref<3x!tpu.dma_semaphore, #tpu.memory_space<semaphore_mem>> -> memref<1x!tpu.dma_semaphore, #tpu.memory_space<semaphore_mem>>
      %279 = tpu.memref_squeeze %278 : memref<1x!tpu.dma_semaphore, #tpu.memory_space<semaphore_mem>> -> memref<!tpu.dma_semaphore, #tpu.memory_space<semaphore_mem>>
      tpu.wait_dma2 semaphore(%279 : memref<!tpu.dma_semaphore, #tpu.memory_space<semaphore_mem>>) src(%275 : memref<128xf32, #tpu.memory_space<any>>) dst(%277 : memref<128xf32, #tpu.memory_space<vmem>>)
      %c16_i32_106 = arith.constant 16 : i32
      %280 = arith.addi %c16_i32_106, %253 : i32
      %c0_i32_107 = arith.constant 0 : i32
      %c2_i32_108 = arith.constant 2 : i32
      %c0_i32_109 = arith.constant 0 : i32
      %281 = tpu.memref_slice %arg5[%c0_i32_107, %c0_i32_109] : memref<64x128xf32, #tpu.memory_space<any>> -> memref<1x128xf32, #tpu.memory_space<any>>
      %282 = tpu.memref_squeeze %281 : memref<1x128xf32, #tpu.memory_space<any>> -> memref<128xf32, #tpu.memory_space<any>>
      %c0_i32_110 = arith.constant 0 : i32
      %283 = tpu.memref_slice %arg9[%280, %c0_i32_110] : memref<80x128xf32, #tpu.memory_space<vmem>> -> memref<1x128xf32, #tpu.memory_space<vmem>>
      %284 = tpu.memref_squeeze %283 : memref<1x128xf32, #tpu.memory_space<vmem>> -> memref<128xf32, #tpu.memory_space<vmem>>
      %285 = tpu.memref_slice %arg10[%c2_i32_108] : memref<3x!tpu.dma_semaphore, #tpu.memory_space<semaphore_mem>> -> memref<1x!tpu.dma_semaphore, #tpu.memory_space<semaphore_mem>>
      %286 = tpu.memref_squeeze %285 : memref<1x!tpu.dma_semaphore, #tpu.memory_space<semaphore_mem>> -> memref<!tpu.dma_semaphore, #tpu.memory_space<semaphore_mem>>
      tpu.wait_dma2 semaphore(%286 : memref<!tpu.dma_semaphore, #tpu.memory_space<semaphore_mem>>) src(%282 : memref<128xf32, #tpu.memory_space<any>>) dst(%284 : memref<128xf32, #tpu.memory_space<vmem>>)
      %c24_i32 = arith.constant 24 : i32
      %287 = arith.addi %c24_i32, %253 : i32
      %c0_i32_111 = arith.constant 0 : i32
      %c2_i32_112 = arith.constant 2 : i32
      %c0_i32_113 = arith.constant 0 : i32
      %288 = tpu.memref_slice %arg5[%c0_i32_111, %c0_i32_113] : memref<64x128xf32, #tpu.memory_space<any>> -> memref<1x128xf32, #tpu.memory_space<any>>
      %289 = tpu.memref_squeeze %288 : memref<1x128xf32, #tpu.memory_space<any>> -> memref<128xf32, #tpu.memory_space<any>>
      %c0_i32_114 = arith.constant 0 : i32
      %290 = tpu.memref_slice %arg9[%287, %c0_i32_114] : memref<80x128xf32, #tpu.memory_space<vmem>> -> memref<1x128xf32, #tpu.memory_space<vmem>>
      %291 = tpu.memref_squeeze %290 : memref<1x128xf32, #tpu.memory_space<vmem>> -> memref<128xf32, #tpu.memory_space<vmem>>
      %292 = tpu.memref_slice %arg10[%c2_i32_112] : memref<3x!tpu.dma_semaphore, #tpu.memory_space<semaphore_mem>> -> memref<1x!tpu.dma_semaphore, #tpu.memory_space<semaphore_mem>>
      %293 = tpu.memref_squeeze %292 : memref<1x!tpu.dma_semaphore, #tpu.memory_space<semaphore_mem>> -> memref<!tpu.dma_semaphore, #tpu.memory_space<semaphore_mem>>
      tpu.wait_dma2 semaphore(%293 : memref<!tpu.dma_semaphore, #tpu.memory_space<semaphore_mem>>) src(%289 : memref<128xf32, #tpu.memory_space<any>>) dst(%291 : memref<128xf32, #tpu.memory_space<vmem>>)
      %c32_i32 = arith.constant 32 : i32
      %294 = arith.addi %c32_i32, %253 : i32
      %c0_i32_115 = arith.constant 0 : i32
      %c2_i32_116 = arith.constant 2 : i32
      %c0_i32_117 = arith.constant 0 : i32
      %295 = tpu.memref_slice %arg5[%c0_i32_115, %c0_i32_117] : memref<64x128xf32, #tpu.memory_space<any>> -> memref<1x128xf32, #tpu.memory_space<any>>
      %296 = tpu.memref_squeeze %295 : memref<1x128xf32, #tpu.memory_space<any>> -> memref<128xf32, #tpu.memory_space<any>>
      %c0_i32_118 = arith.constant 0 : i32
      %297 = tpu.memref_slice %arg9[%294, %c0_i32_118] : memref<80x128xf32, #tpu.memory_space<vmem>> -> memref<1x128xf32, #tpu.memory_space<vmem>>
      %298 = tpu.memref_squeeze %297 : memref<1x128xf32, #tpu.memory_space<vmem>> -> memref<128xf32, #tpu.memory_space<vmem>>
      %299 = tpu.memref_slice %arg10[%c2_i32_116] : memref<3x!tpu.dma_semaphore, #tpu.memory_space<semaphore_mem>> -> memref<1x!tpu.dma_semaphore, #tpu.memory_space<semaphore_mem>>
      %300 = tpu.memref_squeeze %299 : memref<1x!tpu.dma_semaphore, #tpu.memory_space<semaphore_mem>> -> memref<!tpu.dma_semaphore, #tpu.memory_space<semaphore_mem>>
      tpu.wait_dma2 semaphore(%300 : memref<!tpu.dma_semaphore, #tpu.memory_space<semaphore_mem>>) src(%296 : memref<128xf32, #tpu.memory_space<any>>) dst(%298 : memref<128xf32, #tpu.memory_space<vmem>>)
      %c40_i32 = arith.constant 40 : i32
      %301 = arith.addi %c40_i32, %253 : i32
      %c0_i32_119 = arith.constant 0 : i32
      %c2_i32_120 = arith.constant 2 : i32
      %c0_i32_121 = arith.constant 0 : i32
      %302 = tpu.memref_slice %arg5[%c0_i32_119, %c0_i32_121] : memref<64x128xf32, #tpu.memory_space<any>> -> memref<1x128xf32, #tpu.memory_space<any>>
      %303 = tpu.memref_squeeze %302 : memref<1x128xf32, #tpu.memory_space<any>> -> memref<128xf32, #tpu.memory_space<any>>
      %c0_i32_122 = arith.constant 0 : i32
      %304 = tpu.memref_slice %arg9[%301, %c0_i32_122] : memref<80x128xf32, #tpu.memory_space<vmem>> -> memref<1x128xf32, #tpu.memory_space<vmem>>
      %305 = tpu.memref_squeeze %304 : memref<1x128xf32, #tpu.memory_space<vmem>> -> memref<128xf32, #tpu.memory_space<vmem>>
      %306 = tpu.memref_slice %arg10[%c2_i32_120] : memref<3x!tpu.dma_semaphore, #tpu.memory_space<semaphore_mem>> -> memref<1x!tpu.dma_semaphore, #tpu.memory_space<semaphore_mem>>
      %307 = tpu.memref_squeeze %306 : memref<1x!tpu.dma_semaphore, #tpu.memory_space<semaphore_mem>> -> memref<!tpu.dma_semaphore, #tpu.memory_space<semaphore_mem>>
      tpu.wait_dma2 semaphore(%307 : memref<!tpu.dma_semaphore, #tpu.memory_space<semaphore_mem>>) src(%303 : memref<128xf32, #tpu.memory_space<any>>) dst(%305 : memref<128xf32, #tpu.memory_space<vmem>>)
      %c48_i32 = arith.constant 48 : i32
      %308 = arith.addi %c48_i32, %253 : i32
      %c0_i32_123 = arith.constant 0 : i32
      %c2_i32_124 = arith.constant 2 : i32
      %c0_i32_125 = arith.constant 0 : i32
      %309 = tpu.memref_slice %arg5[%c0_i32_123, %c0_i32_125] : memref<64x128xf32, #tpu.memory_space<any>> -> memref<1x128xf32, #tpu.memory_space<any>>
      %310 = tpu.memref_squeeze %309 : memref<1x128xf32, #tpu.memory_space<any>> -> memref<128xf32, #tpu.memory_space<any>>
      %c0_i32_126 = arith.constant 0 : i32
      %311 = tpu.memref_slice %arg9[%308, %c0_i32_126] : memref<80x128xf32, #tpu.memory_space<vmem>> -> memref<1x128xf32, #tpu.memory_space<vmem>>
      %312 = tpu.memref_squeeze %311 : memref<1x128xf32, #tpu.memory_space<vmem>> -> memref<128xf32, #tpu.memory_space<vmem>>
      %313 = tpu.memref_slice %arg10[%c2_i32_124] : memref<3x!tpu.dma_semaphore, #tpu.memory_space<semaphore_mem>> -> memref<1x!tpu.dma_semaphore, #tpu.memory_space<semaphore_mem>>
      %314 = tpu.memref_squeeze %313 : memref<1x!tpu.dma_semaphore, #tpu.memory_space<semaphore_mem>> -> memref<!tpu.dma_semaphore, #tpu.memory_space<semaphore_mem>>
      tpu.wait_dma2 semaphore(%314 : memref<!tpu.dma_semaphore, #tpu.memory_space<semaphore_mem>>) src(%310 : memref<128xf32, #tpu.memory_space<any>>) dst(%312 : memref<128xf32, #tpu.memory_space<vmem>>)
      %c56_i32 = arith.constant 56 : i32
      %315 = arith.addi %c56_i32, %253 : i32
      %c0_i32_127 = arith.constant 0 : i32
      %c2_i32_128 = arith.constant 2 : i32
      %c0_i32_129 = arith.constant 0 : i32
      %316 = tpu.memref_slice %arg5[%c0_i32_127, %c0_i32_129] : memref<64x128xf32, #tpu.memory_space<any>> -> memref<1x128xf32, #tpu.memory_space<any>>
      %317 = tpu.memref_squeeze %316 : memref<1x128xf32, #tpu.memory_space<any>> -> memref<128xf32, #tpu.memory_space<any>>
      %c0_i32_130 = arith.constant 0 : i32
      %318 = tpu.memref_slice %arg9[%315, %c0_i32_130] : memref<80x128xf32, #tpu.memory_space<vmem>> -> memref<1x128xf32, #tpu.memory_space<vmem>>
      %319 = tpu.memref_squeeze %318 : memref<1x128xf32, #tpu.memory_space<vmem>> -> memref<128xf32, #tpu.memory_space<vmem>>
      %320 = tpu.memref_slice %arg10[%c2_i32_128] : memref<3x!tpu.dma_semaphore, #tpu.memory_space<semaphore_mem>> -> memref<1x!tpu.dma_semaphore, #tpu.memory_space<semaphore_mem>>
      %321 = tpu.memref_squeeze %320 : memref<1x!tpu.dma_semaphore, #tpu.memory_space<semaphore_mem>> -> memref<!tpu.dma_semaphore, #tpu.memory_space<semaphore_mem>>
      tpu.wait_dma2 semaphore(%321 : memref<!tpu.dma_semaphore, #tpu.memory_space<semaphore_mem>>) src(%317 : memref<128xf32, #tpu.memory_space<any>>) dst(%319 : memref<128xf32, #tpu.memory_space<vmem>>)
      %c64_i32 = arith.constant 64 : i32
      %322 = arith.addi %c64_i32, %253 : i32
      %c0_i32_131 = arith.constant 0 : i32
      %c2_i32_132 = arith.constant 2 : i32
      %c0_i32_133 = arith.constant 0 : i32
      %323 = tpu.memref_slice %arg5[%c0_i32_131, %c0_i32_133] : memref<64x128xf32, #tpu.memory_space<any>> -> memref<1x128xf32, #tpu.memory_space<any>>
      %324 = tpu.memref_squeeze %323 : memref<1x128xf32, #tpu.memory_space<any>> -> memref<128xf32, #tpu.memory_space<any>>
      %c0_i32_134 = arith.constant 0 : i32
      %325 = tpu.memref_slice %arg9[%322, %c0_i32_134] : memref<80x128xf32, #tpu.memory_space<vmem>> -> memref<1x128xf32, #tpu.memory_space<vmem>>
      %326 = tpu.memref_squeeze %325 : memref<1x128xf32, #tpu.memory_space<vmem>> -> memref<128xf32, #tpu.memory_space<vmem>>
      %327 = tpu.memref_slice %arg10[%c2_i32_132] : memref<3x!tpu.dma_semaphore, #tpu.memory_space<semaphore_mem>> -> memref<1x!tpu.dma_semaphore, #tpu.memory_space<semaphore_mem>>
      %328 = tpu.memref_squeeze %327 : memref<1x!tpu.dma_semaphore, #tpu.memory_space<semaphore_mem>> -> memref<!tpu.dma_semaphore, #tpu.memory_space<semaphore_mem>>
      tpu.wait_dma2 semaphore(%328 : memref<!tpu.dma_semaphore, #tpu.memory_space<semaphore_mem>>) src(%324 : memref<128xf32, #tpu.memory_space<any>>) dst(%326 : memref<128xf32, #tpu.memory_space<vmem>>)
      %c72_i32 = arith.constant 72 : i32
      %329 = arith.addi %c72_i32, %253 : i32
      %c0_i32_135 = arith.constant 0 : i32
      %c2_i32_136 = arith.constant 2 : i32
      %c0_i32_137 = arith.constant 0 : i32
      %330 = tpu.memref_slice %arg5[%c0_i32_135, %c0_i32_137] : memref<64x128xf32, #tpu.memory_space<any>> -> memref<1x128xf32, #tpu.memory_space<any>>
      %331 = tpu.memref_squeeze %330 : memref<1x128xf32, #tpu.memory_space<any>> -> memref<128xf32, #tpu.memory_space<any>>
      %c0_i32_138 = arith.constant 0 : i32
      %332 = tpu.memref_slice %arg9[%329, %c0_i32_138] : memref<80x128xf32, #tpu.memory_space<vmem>> -> memref<1x128xf32, #tpu.memory_space<vmem>>
      %333 = tpu.memref_squeeze %332 : memref<1x128xf32, #tpu.memory_space<vmem>> -> memref<128xf32, #tpu.memory_space<vmem>>
      %334 = tpu.memref_slice %arg10[%c2_i32_136] : memref<3x!tpu.dma_semaphore, #tpu.memory_space<semaphore_mem>> -> memref<1x!tpu.dma_semaphore, #tpu.memory_space<semaphore_mem>>
      %335 = tpu.memref_squeeze %334 : memref<1x!tpu.dma_semaphore, #tpu.memory_space<semaphore_mem>> -> memref<!tpu.dma_semaphore, #tpu.memory_space<semaphore_mem>>
      tpu.wait_dma2 semaphore(%335 : memref<!tpu.dma_semaphore, #tpu.memory_space<semaphore_mem>>) src(%331 : memref<128xf32, #tpu.memory_space<any>>) dst(%333 : memref<128xf32, #tpu.memory_space<vmem>>)
    }
    %c8_i32_5 = arith.constant 8 : i32
    %c0 = arith.constant 0 : index
    %c0_6 = arith.constant 0 : index
    %3 = vector.load %arg7[%c0, %c0_6] : memref<8x128xf32, #tpu.memory_space<vmem>>, vector<8x128xf32>
    %c0_7 = arith.constant 0 : index
    %c0_8 = arith.constant 0 : index
    %4 = vector.load %arg8[%c0_7, %c0_8] : memref<8x128xf32, #tpu.memory_space<vmem>>, vector<8x128xf32>
    %5 = tpu.iota {dimensions = array<i32: 0>} : vector<8x1xi32>
    %6 = vector.broadcast %0 : i32 to vector<8x1xi32>
    %7 = arith.addi %6, %5 : vector<8x1xi32>
    %c16_i32 = arith.constant 16 : i32
    %8 = vector.broadcast %c16_i32 : i32 to vector<8x1xi32>
    %9 = arith.cmpi slt, %7, %8 : vector<8x1xi32>
    %10 = arith.mulf %3, %4 : vector<8x128xf32>
    %cst = arith.constant dense<0.000000e+00> : vector<8xf32>
    %11 = vector.multi_reduction <add>, %10, %cst [1] : vector<8x128xf32> to vector<8xf32>
    %12 = vector.shape_cast %11 : vector<8xf32> to vector<8x1xf32>
    %cst_9 = arith.constant 0.000000e+00 : f32
    %13 = vector.broadcast %cst_9 : f32 to vector<8x1xf32>
    %14 = arith.minimumf %12, %13 : vector<8x1xf32>
    %15 = math.absf %12 : vector<8x1xf32>
    %cst_10 = arith.constant 0.000000e+00 : f32
    %16 = vector.broadcast %cst_10 : f32 to vector<8x1xf32>
    %17 = arith.subf %16, %15 : vector<8x1xf32>
    %18 = math.exp %17 : vector<8x1xf32>
    %19 = math.log1p %18 : vector<8x1xf32>
    %20 = arith.subf %14, %19 : vector<8x1xf32>
    %cst_11 = arith.constant 0.000000e+00 : f32
    %21 = vector.broadcast %cst_11 : f32 to vector<8x1xf32>
    %22 = arith.select %9, %20, %21 : vector<8x1xi1>, vector<8x1xf32>
    %23 = vector.shape_cast %22 : vector<8x1xf32> to vector<1x8x1xf32>
    %cst_12 = arith.constant dense<0.000000e+00> : vector<1xf32>
    %24 = vector.multi_reduction <add>, %23, %cst_12 [1, 2] : vector<1x8x1xf32> to vector<1xf32>
    %25 = vector.shape_cast %24 : vector<1xf32> to vector<1x1x1xf32>
    %26 = vector.extract %25[0, 0, 0] : f32 from vector<1x1x1xf32>
    %27 = vector.broadcast %26 : f32 to vector<1x1xf32>
    %c0_13 = arith.constant 0 : index
    %c0_14 = arith.constant 0 : index
    %28 = vector.load %arg9[%c0_13, %c0_14] : memref<80x128xf32, #tpu.memory_space<vmem>>, vector<8x128xf32>
    %29 = arith.mulf %3, %28 : vector<8x128xf32>
    %cst_15 = arith.constant dense<0.000000e+00> : vector<8xf32>
    %30 = vector.multi_reduction <add>, %29, %cst_15 [1] : vector<8x128xf32> to vector<8xf32>
    %31 = vector.shape_cast %30 : vector<8xf32> to vector<8x1xf32>
    %cst_16 = arith.constant 0.000000e+00 : f32
    %32 = vector.broadcast %cst_16 : f32 to vector<8x1xf32>
    %33 = arith.subf %32, %31 : vector<8x1xf32>
    %cst_17 = arith.constant 0.000000e+00 : f32
    %34 = vector.broadcast %cst_17 : f32 to vector<8x1xf32>
    %35 = arith.minimumf %33, %34 : vector<8x1xf32>
    %36 = math.absf %33 : vector<8x1xf32>
    %cst_18 = arith.constant 0.000000e+00 : f32
    %37 = vector.broadcast %cst_18 : f32 to vector<8x1xf32>
    %38 = arith.subf %37, %36 : vector<8x1xf32>
    %39 = math.exp %38 : vector<8x1xf32>
    %40 = math.log1p %39 : vector<8x1xf32>
    %41 = arith.subf %35, %40 : vector<8x1xf32>
    %cst_19 = arith.constant 0.000000e+00 : f32
    %42 = vector.broadcast %cst_19 : f32 to vector<8x1xf32>
    %43 = arith.select %9, %41, %42 : vector<8x1xi1>, vector<8x1xf32>
    %44 = vector.shape_cast %43 : vector<8x1xf32> to vector<1x8x1xf32>
    %cst_20 = arith.constant dense<0.000000e+00> : vector<1xf32>
    %45 = vector.multi_reduction <add>, %44, %cst_20 [1, 2] : vector<1x8x1xf32> to vector<1xf32>
    %46 = vector.shape_cast %45 : vector<1xf32> to vector<1x1x1xf32>
    %47 = vector.extract %46[0, 0, 0] : f32 from vector<1x1x1xf32>
    %48 = vector.broadcast %47 : f32 to vector<1x1xf32>
    %49 = arith.addf %27, %48 : vector<1x1xf32>
    %c8 = arith.constant 8 : index
    %c0_21 = arith.constant 0 : index
    %50 = vector.load %arg9[%c8, %c0_21] : memref<80x128xf32, #tpu.memory_space<vmem>>, vector<8x128xf32>
    %51 = arith.mulf %3, %50 : vector<8x128xf32>
    %cst_22 = arith.constant dense<0.000000e+00> : vector<8xf32>
    %52 = vector.multi_reduction <add>, %51, %cst_22 [1] : vector<8x128xf32> to vector<8xf32>
    %53 = vector.shape_cast %52 : vector<8xf32> to vector<8x1xf32>
    %cst_23 = arith.constant 0.000000e+00 : f32
    %54 = vector.broadcast %cst_23 : f32 to vector<8x1xf32>
    %55 = arith.subf %54, %53 : vector<8x1xf32>
    %cst_24 = arith.constant 0.000000e+00 : f32
    %56 = vector.broadcast %cst_24 : f32 to vector<8x1xf32>
    %57 = arith.minimumf %55, %56 : vector<8x1xf32>
    %58 = math.absf %55 : vector<8x1xf32>
    %cst_25 = arith.constant 0.000000e+00 : f32
    %59 = vector.broadcast %cst_25 : f32 to vector<8x1xf32>
    %60 = arith.subf %59, %58 : vector<8x1xf32>
    %61 = math.exp %60 : vector<8x1xf32>
    %62 = math.log1p %61 : vector<8x1xf32>
    %63 = arith.subf %57, %62 : vector<8x1xf32>
    %cst_26 = arith.constant 0.000000e+00 : f32
    %64 = vector.broadcast %cst_26 : f32 to vector<8x1xf32>
    %65 = arith.select %9, %63, %64 : vector<8x1xi1>, vector<8x1xf32>
    %66 = vector.shape_cast %65 : vector<8x1xf32> to vector<1x8x1xf32>
    %cst_27 = arith.constant dense<0.000000e+00> : vector<1xf32>
    %67 = vector.multi_reduction <add>, %66, %cst_27 [1, 2] : vector<1x8x1xf32> to vector<1xf32>
    %68 = vector.shape_cast %67 : vector<1xf32> to vector<1x1x1xf32>
    %69 = vector.extract %68[0, 0, 0] : f32 from vector<1x1x1xf32>
    %70 = vector.broadcast %69 : f32 to vector<1x1xf32>
    %71 = arith.addf %49, %70 : vector<1x1xf32>
    %c16 = arith.constant 16 : index
    %c0_28 = arith.constant 0 : index
    %72 = vector.load %arg9[%c16, %c0_28] : memref<80x128xf32, #tpu.memory_space<vmem>>, vector<8x128xf32>
    %73 = arith.mulf %3, %72 : vector<8x128xf32>
    %cst_29 = arith.constant dense<0.000000e+00> : vector<8xf32>
    %74 = vector.multi_reduction <add>, %73, %cst_29 [1] : vector<8x128xf32> to vector<8xf32>
    %75 = vector.shape_cast %74 : vector<8xf32> to vector<8x1xf32>
    %cst_30 = arith.constant 0.000000e+00 : f32
    %76 = vector.broadcast %cst_30 : f32 to vector<8x1xf32>
    %77 = arith.subf %76, %75 : vector<8x1xf32>
    %cst_31 = arith.constant 0.000000e+00 : f32
    %78 = vector.broadcast %cst_31 : f32 to vector<8x1xf32>
    %79 = arith.minimumf %77, %78 : vector<8x1xf32>
    %80 = math.absf %77 : vector<8x1xf32>
    %cst_32 = arith.constant 0.000000e+00 : f32
    %81 = vector.broadcast %cst_32 : f32 to vector<8x1xf32>
    %82 = arith.subf %81, %80 : vector<8x1xf32>
    %83 = math.exp %82 : vector<8x1xf32>
    %84 = math.log1p %83 : vector<8x1xf32>
    %85 = arith.subf %79, %84 : vector<8x1xf32>
    %cst_33 = arith.constant 0.000000e+00 : f32
    %86 = vector.broadcast %cst_33 : f32 to vector<8x1xf32>
    %87 = arith.select %9, %85, %86 : vector<8x1xi1>, vector<8x1xf32>
    %88 = vector.shape_cast %87 : vector<8x1xf32> to vector<1x8x1xf32>
    %cst_34 = arith.constant dense<0.000000e+00> : vector<1xf32>
    %89 = vector.multi_reduction <add>, %88, %cst_34 [1, 2] : vector<1x8x1xf32> to vector<1xf32>
    %90 = vector.shape_cast %89 : vector<1xf32> to vector<1x1x1xf32>
    %91 = vector.extract %90[0, 0, 0] : f32 from vector<1x1x1xf32>
    %92 = vector.broadcast %91 : f32 to vector<1x1xf32>
    %93 = arith.addf %71, %92 : vector<1x1xf32>
    %c24 = arith.constant 24 : index
    %c0_35 = arith.constant 0 : index
    %94 = vector.load %arg9[%c24, %c0_35] : memref<80x128xf32, #tpu.memory_space<vmem>>, vector<8x128xf32>
    %95 = arith.mulf %3, %94 : vector<8x128xf32>
    %cst_36 = arith.constant dense<0.000000e+00> : vector<8xf32>
    %96 = vector.multi_reduction <add>, %95, %cst_36 [1] : vector<8x128xf32> to vector<8xf32>
    %97 = vector.shape_cast %96 : vector<8xf32> to vector<8x1xf32>
    %cst_37 = arith.constant 0.000000e+00 : f32
    %98 = vector.broadcast %cst_37 : f32 to vector<8x1xf32>
    %99 = arith.subf %98, %97 : vector<8x1xf32>
    %cst_38 = arith.constant 0.000000e+00 : f32
    %100 = vector.broadcast %cst_38 : f32 to vector<8x1xf32>
    %101 = arith.minimumf %99, %100 : vector<8x1xf32>
    %102 = math.absf %99 : vector<8x1xf32>
    %cst_39 = arith.constant 0.000000e+00 : f32
    %103 = vector.broadcast %cst_39 : f32 to vector<8x1xf32>
    %104 = arith.subf %103, %102 : vector<8x1xf32>
    %105 = math.exp %104 : vector<8x1xf32>
    %106 = math.log1p %105 : vector<8x1xf32>
    %107 = arith.subf %101, %106 : vector<8x1xf32>
    %cst_40 = arith.constant 0.000000e+00 : f32
    %108 = vector.broadcast %cst_40 : f32 to vector<8x1xf32>
    %109 = arith.select %9, %107, %108 : vector<8x1xi1>, vector<8x1xf32>
    %110 = vector.shape_cast %109 : vector<8x1xf32> to vector<1x8x1xf32>
    %cst_41 = arith.constant dense<0.000000e+00> : vector<1xf32>
    %111 = vector.multi_reduction <add>, %110, %cst_41 [1, 2] : vector<1x8x1xf32> to vector<1xf32>
    %112 = vector.shape_cast %111 : vector<1xf32> to vector<1x1x1xf32>
    %113 = vector.extract %112[0, 0, 0] : f32 from vector<1x1x1xf32>
    %114 = vector.broadcast %113 : f32 to vector<1x1xf32>
    %115 = arith.addf %93, %114 : vector<1x1xf32>
    %c32 = arith.constant 32 : index
    %c0_42 = arith.constant 0 : index
    %116 = vector.load %arg9[%c32, %c0_42] : memref<80x128xf32, #tpu.memory_space<vmem>>, vector<8x128xf32>
    %117 = arith.mulf %3, %116 : vector<8x128xf32>
    %cst_43 = arith.constant dense<0.000000e+00> : vector<8xf32>
    %118 = vector.multi_reduction <add>, %117, %cst_43 [1] : vector<8x128xf32> to vector<8xf32>
    %119 = vector.shape_cast %118 : vector<8xf32> to vector<8x1xf32>
    %cst_44 = arith.constant 0.000000e+00 : f32
    %120 = vector.broadcast %cst_44 : f32 to vector<8x1xf32>
    %121 = arith.subf %120, %119 : vector<8x1xf32>
    %cst_45 = arith.constant 0.000000e+00 : f32
    %122 = vector.broadcast %cst_45 : f32 to vector<8x1xf32>
    %123 = arith.minimumf %121, %122 : vector<8x1xf32>
    %124 = math.absf %121 : vector<8x1xf32>
    %cst_46 = arith.constant 0.000000e+00 : f32
    %125 = vector.broadcast %cst_46 : f32 to vector<8x1xf32>
    %126 = arith.subf %125, %124 : vector<8x1xf32>
    %127 = math.exp %126 : vector<8x1xf32>
    %128 = math.log1p %127 : vector<8x1xf32>
    %129 = arith.subf %123, %128 : vector<8x1xf32>
    %cst_47 = arith.constant 0.000000e+00 : f32
    %130 = vector.broadcast %cst_47 : f32 to vector<8x1xf32>
    %131 = arith.select %9, %129, %130 : vector<8x1xi1>, vector<8x1xf32>
    %132 = vector.shape_cast %131 : vector<8x1xf32> to vector<1x8x1xf32>
    %cst_48 = arith.constant dense<0.000000e+00> : vector<1xf32>
    %133 = vector.multi_reduction <add>, %132, %cst_48 [1, 2] : vector<1x8x1xf32> to vector<1xf32>
    %134 = vector.shape_cast %133 : vector<1xf32> to vector<1x1x1xf32>
    %135 = vector.extract %134[0, 0, 0] : f32 from vector<1x1x1xf32>
    %136 = vector.broadcast %135 : f32 to vector<1x1xf32>
    %137 = arith.addf %115, %136 : vector<1x1xf32>
    %c40 = arith.constant 40 : index
    %c0_49 = arith.constant 0 : index
    %138 = vector.load %arg9[%c40, %c0_49] : memref<80x128xf32, #tpu.memory_space<vmem>>, vector<8x128xf32>
    %139 = arith.mulf %3, %138 : vector<8x128xf32>
    %cst_50 = arith.constant dense<0.000000e+00> : vector<8xf32>
    %140 = vector.multi_reduction <add>, %139, %cst_50 [1] : vector<8x128xf32> to vector<8xf32>
    %141 = vector.shape_cast %140 : vector<8xf32> to vector<8x1xf32>
    %cst_51 = arith.constant 0.000000e+00 : f32
    %142 = vector.broadcast %cst_51 : f32 to vector<8x1xf32>
    %143 = arith.subf %142, %141 : vector<8x1xf32>
    %cst_52 = arith.constant 0.000000e+00 : f32
    %144 = vector.broadcast %cst_52 : f32 to vector<8x1xf32>
    %145 = arith.minimumf %143, %144 : vector<8x1xf32>
    %146 = math.absf %143 : vector<8x1xf32>
    %cst_53 = arith.constant 0.000000e+00 : f32
    %147 = vector.broadcast %cst_53 : f32 to vector<8x1xf32>
    %148 = arith.subf %147, %146 : vector<8x1xf32>
    %149 = math.exp %148 : vector<8x1xf32>
    %150 = math.log1p %149 : vector<8x1xf32>
    %151 = arith.subf %145, %150 : vector<8x1xf32>
    %cst_54 = arith.constant 0.000000e+00 : f32
    %152 = vector.broadcast %cst_54 : f32 to vector<8x1xf32>
    %153 = arith.select %9, %151, %152 : vector<8x1xi1>, vector<8x1xf32>
    %154 = vector.shape_cast %153 : vector<8x1xf32> to vector<1x8x1xf32>
    %cst_55 = arith.constant dense<0.000000e+00> : vector<1xf32>
    %155 = vector.multi_reduction <add>, %154, %cst_55 [1, 2] : vector<1x8x1xf32> to vector<1xf32>
    %156 = vector.shape_cast %155 : vector<1xf32> to vector<1x1x1xf32>
    %157 = vector.extract %156[0, 0, 0] : f32 from vector<1x1x1xf32>
    %158 = vector.broadcast %157 : f32 to vector<1x1xf32>
    %159 = arith.addf %137, %158 : vector<1x1xf32>
    %c48 = arith.constant 48 : index
    %c0_56 = arith.constant 0 : index
    %160 = vector.load %arg9[%c48, %c0_56] : memref<80x128xf32, #tpu.memory_space<vmem>>, vector<8x128xf32>
    %161 = arith.mulf %3, %160 : vector<8x128xf32>
    %cst_57 = arith.constant dense<0.000000e+00> : vector<8xf32>
    %162 = vector.multi_reduction <add>, %161, %cst_57 [1] : vector<8x128xf32> to vector<8xf32>
    %163 = vector.shape_cast %162 : vector<8xf32> to vector<8x1xf32>
    %cst_58 = arith.constant 0.000000e+00 : f32
    %164 = vector.broadcast %cst_58 : f32 to vector<8x1xf32>
    %165 = arith.subf %164, %163 : vector<8x1xf32>
    %cst_59 = arith.constant 0.000000e+00 : f32
    %166 = vector.broadcast %cst_59 : f32 to vector<8x1xf32>
    %167 = arith.minimumf %165, %166 : vector<8x1xf32>
    %168 = math.absf %165 : vector<8x1xf32>
    %cst_60 = arith.constant 0.000000e+00 : f32
    %169 = vector.broadcast %cst_60 : f32 to vector<8x1xf32>
    %170 = arith.subf %169, %168 : vector<8x1xf32>
    %171 = math.exp %170 : vector<8x1xf32>
    %172 = math.log1p %171 : vector<8x1xf32>
    %173 = arith.subf %167, %172 : vector<8x1xf32>
    %cst_61 = arith.constant 0.000000e+00 : f32
    %174 = vector.broadcast %cst_61 : f32 to vector<8x1xf32>
    %175 = arith.select %9, %173, %174 : vector<8x1xi1>, vector<8x1xf32>
    %176 = vector.shape_cast %175 : vector<8x1xf32> to vector<1x8x1xf32>
    %cst_62 = arith.constant dense<0.000000e+00> : vector<1xf32>
    %177 = vector.multi_reduction <add>, %176, %cst_62 [1, 2] : vector<1x8x1xf32> to vector<1xf32>
    %178 = vector.shape_cast %177 : vector<1xf32> to vector<1x1x1xf32>
    %179 = vector.extract %178[0, 0, 0] : f32 from vector<1x1x1xf32>
    %180 = vector.broadcast %179 : f32 to vector<1x1xf32>
    %181 = arith.addf %159, %180 : vector<1x1xf32>
    %c56 = arith.constant 56 : index
    %c0_63 = arith.constant 0 : index
    %182 = vector.load %arg9[%c56, %c0_63] : memref<80x128xf32, #tpu.memory_space<vmem>>, vector<8x128xf32>
    %183 = arith.mulf %3, %182 : vector<8x128xf32>
    %cst_64 = arith.constant dense<0.000000e+00> : vector<8xf32>
    %184 = vector.multi_reduction <add>, %183, %cst_64 [1] : vector<8x128xf32> to vector<8xf32>
    %185 = vector.shape_cast %184 : vector<8xf32> to vector<8x1xf32>
    %cst_65 = arith.constant 0.000000e+00 : f32
    %186 = vector.broadcast %cst_65 : f32 to vector<8x1xf32>
    %187 = arith.subf %186, %185 : vector<8x1xf32>
    %cst_66 = arith.constant 0.000000e+00 : f32
    %188 = vector.broadcast %cst_66 : f32 to vector<8x1xf32>
    %189 = arith.minimumf %187, %188 : vector<8x1xf32>
    %190 = math.absf %187 : vector<8x1xf32>
    %cst_67 = arith.constant 0.000000e+00 : f32
    %191 = vector.broadcast %cst_67 : f32 to vector<8x1xf32>
    %192 = arith.subf %191, %190 : vector<8x1xf32>
    %193 = math.exp %192 : vector<8x1xf32>
    %194 = math.log1p %193 : vector<8x1xf32>
    %195 = arith.subf %189, %194 : vector<8x1xf32>
    %cst_68 = arith.constant 0.000000e+00 : f32
    %196 = vector.broadcast %cst_68 : f32 to vector<8x1xf32>
    %197 = arith.select %9, %195, %196 : vector<8x1xi1>, vector<8x1xf32>
    %198 = vector.shape_cast %197 : vector<8x1xf32> to vector<1x8x1xf32>
    %cst_69 = arith.constant dense<0.000000e+00> : vector<1xf32>
    %199 = vector.multi_reduction <add>, %198, %cst_69 [1, 2] : vector<1x8x1xf32> to vector<1xf32>
    %200 = vector.shape_cast %199 : vector<1xf32> to vector<1x1x1xf32>
    %201 = vector.extract %200[0, 0, 0] : f32 from vector<1x1x1xf32>
    %202 = vector.broadcast %201 : f32 to vector<1x1xf32>
    %203 = arith.addf %181, %202 : vector<1x1xf32>
    %c64 = arith.constant 64 : index
    %c0_70 = arith.constant 0 : index
    %204 = vector.load %arg9[%c64, %c0_70] : memref<80x128xf32, #tpu.memory_space<vmem>>, vector<8x128xf32>
    %205 = arith.mulf %3, %204 : vector<8x128xf32>
    %cst_71 = arith.constant dense<0.000000e+00> : vector<8xf32>
    %206 = vector.multi_reduction <add>, %205, %cst_71 [1] : vector<8x128xf32> to vector<8xf32>
    %207 = vector.shape_cast %206 : vector<8xf32> to vector<8x1xf32>
    %cst_72 = arith.constant 0.000000e+00 : f32
    %208 = vector.broadcast %cst_72 : f32 to vector<8x1xf32>
    %209 = arith.subf %208, %207 : vector<8x1xf32>
    %cst_73 = arith.constant 0.000000e+00 : f32
    %210 = vector.broadcast %cst_73 : f32 to vector<8x1xf32>
    %211 = arith.minimumf %209, %210 : vector<8x1xf32>
    %212 = math.absf %209 : vector<8x1xf32>
    %cst_74 = arith.constant 0.000000e+00 : f32
    %213 = vector.broadcast %cst_74 : f32 to vector<8x1xf32>
    %214 = arith.subf %213, %212 : vector<8x1xf32>
    %215 = math.exp %214 : vector<8x1xf32>
    %216 = math.log1p %215 : vector<8x1xf32>
    %217 = arith.subf %211, %216 : vector<8x1xf32>
    %cst_75 = arith.constant 0.000000e+00 : f32
    %218 = vector.broadcast %cst_75 : f32 to vector<8x1xf32>
    %219 = arith.select %9, %217, %218 : vector<8x1xi1>, vector<8x1xf32>
    %220 = vector.shape_cast %219 : vector<8x1xf32> to vector<1x8x1xf32>
    %cst_76 = arith.constant dense<0.000000e+00> : vector<1xf32>
    %221 = vector.multi_reduction <add>, %220, %cst_76 [1, 2] : vector<1x8x1xf32> to vector<1xf32>
    %222 = vector.shape_cast %221 : vector<1xf32> to vector<1x1x1xf32>
    %223 = vector.extract %222[0, 0, 0] : f32 from vector<1x1x1xf32>
    %224 = vector.broadcast %223 : f32 to vector<1x1xf32>
    %225 = arith.addf %203, %224 : vector<1x1xf32>
    %c72 = arith.constant 72 : index
    %c0_77 = arith.constant 0 : index
    %226 = vector.load %arg9[%c72, %c0_77] : memref<80x128xf32, #tpu.memory_space<vmem>>, vector<8x128xf32>
    %227 = arith.mulf %3, %226 : vector<8x128xf32>
    %cst_78 = arith.constant dense<0.000000e+00> : vector<8xf32>
    %228 = vector.multi_reduction <add>, %227, %cst_78 [1] : vector<8x128xf32> to vector<8xf32>
    %229 = vector.shape_cast %228 : vector<8xf32> to vector<8x1xf32>
    %cst_79 = arith.constant 0.000000e+00 : f32
    %230 = vector.broadcast %cst_79 : f32 to vector<8x1xf32>
    %231 = arith.subf %230, %229 : vector<8x1xf32>
    %cst_80 = arith.constant 0.000000e+00 : f32
    %232 = vector.broadcast %cst_80 : f32 to vector<8x1xf32>
    %233 = arith.minimumf %231, %232 : vector<8x1xf32>
    %234 = math.absf %231 : vector<8x1xf32>
    %cst_81 = arith.constant 0.000000e+00 : f32
    %235 = vector.broadcast %cst_81 : f32 to vector<8x1xf32>
    %236 = arith.subf %235, %234 : vector<8x1xf32>
    %237 = math.exp %236 : vector<8x1xf32>
    %238 = math.log1p %237 : vector<8x1xf32>
    %239 = arith.subf %233, %238 : vector<8x1xf32>
    %cst_82 = arith.constant 0.000000e+00 : f32
    %240 = vector.broadcast %cst_82 : f32 to vector<8x1xf32>
    %241 = arith.select %9, %239, %240 : vector<8x1xi1>, vector<8x1xf32>
    %242 = vector.shape_cast %241 : vector<8x1xf32> to vector<1x8x1xf32>
    %cst_83 = arith.constant dense<0.000000e+00> : vector<1xf32>
    %243 = vector.multi_reduction <add>, %242, %cst_83 [1, 2] : vector<1x8x1xf32> to vector<1xf32>
    %244 = vector.shape_cast %243 : vector<1xf32> to vector<1x1x1xf32>
    %245 = vector.extract %244[0, 0, 0] : f32 from vector<1x1x1xf32>
    %246 = vector.broadcast %245 : f32 to vector<1x1xf32>
    %247 = arith.addf %225, %246 : vector<1x1xf32>
    %248 = vector.shape_cast %247 : vector<1x1xf32> to vector<1x1x1xf32>
    %249 = vector.shape_cast %248 : vector<1x1x1xf32> to vector<1x1x1xf32>
    %250 = vector.broadcast %249 : vector<1x1x1xf32> to vector<1x8x128xf32>
    %c0_84 = arith.constant 0 : index
    %c0_85 = arith.constant 0 : index
    %c0_86 = arith.constant 0 : index
    %251 = vector.load %arg6[%c0_84, %c0_85, %c0_86] : memref<1x8x128xf32, #tpu.memory_space<vmem>>, vector<1x8x128xf32>
    tpu.vector_store %arg6[%c0_84, %c0_85, %c0_86], %250 {strides = array<i32>} : memref<1x8x128xf32, #tpu.memory_space<vmem>>, vector<1x8x128xf32>,
    return
  }
  func.func @transform_2(%arg0: i32, %arg1: memref<16xi32, #tpu.memory_space<smem>>, %arg2: memref<16xi32, #tpu.memory_space<smem>>, %arg3: memref<160xi32, #tpu.memory_space<smem>>) -> (i32, i32, i32) {
    %c0_i32 = arith.constant 0 : i32
    %c0_i32_0 = arith.constant 0 : i32
    %c0_i32_1 = arith.constant 0 : i32
    return %arg0, %c0_i32, %c0_i32_0 : i32, i32, i32
  }
}

</mosaic_0001>

<bundles_post_ra>
// kernel: tpu_custom_call.1
= control target key start
LH: loop header
LB: loop body
LE: loop exit
PB: predicated region body
PF: predicated region fallthrough
CT: control target
= control target key end

     0   :  { %s1879_s0 = inlined_call_operand.hbm [shape: s32[16], index: 0, kind: input, shape index: {}]   ;;  %s1880_s3 = inlined_call_operand.hbm [shape: f32[64,128], index: 3, kind: input, shape index: {}]   ;;  %s1881_s4 = inlined_call_operand.hbm [shape: f32[64,128], index: 4, kind: input, shape index: {}]   ;;  %s1882_s5 = inlined_call_operand.hbm [shape: f32[2,8,128], index: 5, kind: output, shape index: {}]   ;;  %s1883_s1 = inlined_call_operand.vmem [shape: s32[16], index: 1, kind: input, shape index: {}]   ;;  %s1884_s2 = inlined_call_operand.vmem [shape: s32[160], index: 2, kind: input, shape index: {}]  }
   0x1   :  { %1888 = sst [smem:[#allocation45_spill]] %s1880_s3  ;;  %s945_s20 = scalar_lea.hbm %s1879_s0, 16 }
   0x2   :  { %p946_p0 = scmp.ne.s32.totalorder %s1879_s0, %s945_s20  ;;  %p949_p1 = scmp.lt.u32.totalorder %s945_s20, %s1879_s0 }
   0x4   :  { %p951_p2 = pnand %p949_p1, %p946_p0 }
   0x6   :  { %954 = shalt.err (!%p951_p2)  }
   0x7   :  { %s1347_s25 = smov [#allocation7]   ;;  %s12_s30 = sshll.u32 %s1883_s1, 4  ;;  %s13_s30 = int_to_ptr.vmem [resolvable:$true] %s12_s30 }
   0x8   :  { %11 = dma.hbm_to_smem %s1879_s0, 16, %s1347_s25, [#allocation6] }
   0x9   :  { %s16_s8 = sshll.u32 %s1884_s2, 4  ;;  %s955_s9 = scalar_lea.vmem %s13_s30, 16  ;;  %s17_s8 = int_to_ptr.vmem [resolvable:$true] %s16_s8 }
   0xa   :  { %p956_p3 = scmp.ne.s32.totalorder %s13_s30, %s955_s9  ;;  %p960_p4 = scmp.lt.s32.totalorder %s13_s30, %s13_s30 }
   0xb   :  { %p961_p5 = scmp.lt.s32.totalorder %s955_s9, %s955_s9 }
   0xd   :  { %p962_p6 = por %p961_p5, %p960_p4 }
   0xf   :  { %p963_p7 = pnand %p962_p6, %p956_p3 }
  0x11   :  { %966 = shalt.err (!%p963_p7)  }
  0x12   :  { %s1348_s10 = smov [#allocation8]   ;;  %s967_s0 = scalar_lea.vmem %s17_s8, 32 }
  0x13   :  { %15 = dma.vmem_to_smem %s13_s30, 16, %s1348_s10, [#allocation6] }
  0x14   :  { %p968_p8 = scmp.ne.s32.totalorder %s17_s8, %s967_s0  ;;  %p972_p9 = scmp.lt.s32.totalorder %s17_s8, %s17_s8 }
  0x15   :  { %p973_p10 = scmp.lt.s32.totalorder %s967_s0, %s967_s0 }
  0x17   :  { %p974_p11 = por %p973_p10, %p972_p9 }
  0x19   :  { %p975_p12 = pnand %p974_p11, %p968_p8 }
  0x1b   :  { %978 = shalt.err (!%p975_p12)  }
  0x1c   :  { %s1349_s1 = smov [#allocation9]  }
  0x1d   :  { %19 = dma.vmem_to_smem %s17_s8, 32, %s1349_s1, [#allocation6] }
  0x1e   :  { %1315 = dma.done.wait [#allocation6], 64 }
  0x1f   :  { %1316 = vsyncadd [#allocation6], 4294967232 }
  0x20   :  { %21 = sfence }
  0x21   :  { %22 = vsyncpa [#allocation11], 0 }
  0x22   :  { %24 = vsyncpa [#allocation11 + $0x1], 0  ;;  %s1402_s2 = smov 0   ;;  %s1404_s11 = smov 0  }
  0x23   :  { %s1406_s12 = smov 0  }
  0x24 LB: > { %s805_s13 = sadd.s32 4294967295, %s1337_s12   ;;  %s1419_s14 = sadd.s32 1, %s1337_s12   ;;  %s1337_s12 = sphi %s1406_s12, %s1914_s12   ;;  %s1333_s11 = sphi %s1404_s11, %s1917_s11   ;;  %s1329_s2 = sphi %s1402_s2, %s1916_s2  }
  0x25   : > { %1889 = sst [smem:[#allocation43_spill]] %s1419_s14  ;;  %s33_s15 = ssub.s32 %s1337_s12, %s1419_s14 }
  0x26   : > { %s36_s16 = sadd.s32 1, %s1333_s11  ;;  %p34_p13 = scmp.eq.s32.totalorder %s33_s15, 0 }
  0x27   : > { %p806_p0 = scmp.ne.s32.totalorder %s33_s15, 0  ;;  %p40_p1 = scmp.eq.s32.totalorder %s1337_s12, 1 }
  0x28   : > { %p45_p2 = scmp.ne.s32.totalorder %s1333_s11, %s1329_s2  ;;  %p46_p4 = scmp.eq.s32.totalorder %s805_s13, 1 }
  0x29   : > { %s1428_s17 = scalar_select %p34_p13, %s1333_s11, %s36_s16  }
  0x2a   : > { %p1430_p3 = por %p806_p0, %p40_p1  ;;  %p1434_p5 = por %p46_p4, %p45_p2 }
  0x2b   : > { %1890 = sst [smem:[#allocation44_spill]] %s1428_s17  ;;  %p807_p6 = scmp.ge.s32.totalorder %s1337_s12, 2 }
  0x2c   : > { %s1892_s19 = scalar_select %p1434_p5, 1, 0 }
  0x2d   : > { %55 = sbr.rel (%p807_p6) target bundleno = 780 (0x30c), region = 12  ;;  %s1885_s20 = sand.u32 (!%p807_p6), 1, %s1333_s11  }
  0x2e   : > { %s1443_s22 = sshll.u32 (!%p807_p6), %s1885_s20, 3  ;;  %s1446_s24 = smov (!%p807_p6), 0  }
  0x34 LB: >> { %s1893_s21 = sshll.u32 %s1337_s12, 3  ;;  %s74_s27 = scalar_lea.vmem [#allocation2], %s1341_s24  ;;  %s1341_s24 = sphi %s1446_s24, %s69_s24  }
  0x35   : >> { %s70_s25 = sadd.s32 %s1341_s24, %s1893_s21  ;;  %s82_s28 = sshll.u32 %s74_s27, 4  ;;  %s1455_s28 = int_to_ptr.vmem [resolvable:$true] %s82_s28 }
  0x36   : >> { %s71_s26 = sld [smem:[#allocation7 + %s70_s25]]  ;;  %s1457_s29 = smul.u32 10, %s70_s25 }
  0x37   : >> { %s1459_s30 = sld [smem:[#allocation8 + %s70_s25]]  ;;  %s89_s7 = scalar_lea.vmem [#allocation3], %s1341_s24 }
  0x38   : >> { %s1462_s6 = sld [smem:[#allocation9 + %s1457_s29]]  ;;  %s98_s8 = sshll.u32 %s89_s7, 4  ;;  %s1469_s8 = int_to_ptr.vmem [resolvable:$true] %s98_s8 }
  0x39   : >> { %s1466_s9 = scalar_lea.vmem [#allocation4], %s1341_s24  ;;  %s119_s1 = sadd.s32 1, %s1457_s29 }
  0x3a   : >> { %s115_s10 = sshll.u32 %s1466_s9, 4  ;;  %s1894_s3 = sld [smem:[#allocation45_spill]]  ;;  %s1471_s10 = int_to_ptr.vmem [resolvable:$true] %s115_s10 }
  0x3b   : >> { %s1477_s25 = sld [smem:[#allocation9 + %s119_s1]] }
  0x3c   : >> { %s810_s0 = sshll.u32 %s71_s26, 4 }
  0x40   : >> { %s73_s16 = scalar_lea.hbm %s1894_s3, %s810_s0  ;;  %s981_s23 = scalar_lea.hbm %s1894_s3, 1024 }
  0x41   : >> { %s979_s27 = scalar_lea.hbm %s73_s16, 16  ;;  %p982_p8 = scmp.lt.u32.totalorder %s73_s16, %s1894_s3 }
  0x42   : >> { %p980_p7 = scmp.ne.s32.totalorder %s73_s16, %s979_s27  ;;  %p983_p9 = scmp.lt.u32.totalorder %s981_s23, %s979_s27 }
  0x43   : >> { %p985_p11 = scmp.lt.u32.totalorder %s979_s27, %s73_s16 }
  0x44   : >> { %p984_p10 = por %p983_p9, %p982_p8 }
  0x46   : >> { %p986_p12 = por %p985_p11, %p984_p10 }
  0x48   : >> { %p987_p13 = pnand %p986_p12, %p980_p7 }
  0x4a   : >> { %990 = shalt.err (!%p987_p13)  }
  0x4b   : >> { %s991_s26 = scalar_lea.vmem %s1455_s28, 16  ;;  %s1350_s0 = smov [#allocation2]  }
  0x4c   : >> { %p992_p0 = scmp.ne.s32.totalorder %s1455_s28, %s991_s26  ;;  %s993_s1 = sshll.u32 %s1350_s0, 4  ;;  %s994_s1 = int_to_ptr.vmem [resolvable:$false] %s993_s1 }
  0x4d   : >> { %s995_s20 = scalar_lea.vmem %s994_s1, 128  ;;  %p996_p1 = scmp.lt.s32.totalorder %s1455_s28, %s994_s1 }
  0x4e   : >> { %p997_p2 = scmp.lt.s32.totalorder %s995_s20, %s991_s26 }
  0x50   : >> { %p998_p4 = por %p997_p2, %p996_p1 }
  0x52   : >> { %p999_p6 = pnand %p998_p4, %p992_p0 }
  0x54   : >> { %1002 = shalt.err (!%p999_p6)  }
  0x55   : >> { %85 = dma.hbm_to_vmem [thread:$0]  %s73_s16, 16, %s1455_s28, [#allocation5] }
  0x56   : >> { %s811_s17 = sshll.u32 %s1459_s30, 4  ;;  %s812_s21 = sshll.u32 %s1462_s6, 4 }
  0x57   : >> { %s88_s15 = scalar_lea.hbm %s1881_s4, %s811_s17  ;;  %s1497_s0 = scalar_lea.hbm %s1881_s4, %s812_s21 }
  0x58   : >> { %s1003_s1 = scalar_lea.hbm %s88_s15, 16  ;;  %s1502_s3 = scalar_lea.hbm %s1881_s4, 1024 }
  0x59   : >> { %p1004_p7 = scmp.ne.s32.totalorder %s88_s15, %s1003_s1  ;;  %p1006_p8 = scmp.lt.u32.totalorder %s88_s15, %s1881_s4 }
  0x5a   : >> { %p1007_p9 = scmp.lt.u32.totalorder %s1502_s3, %s1003_s1  ;;  %p1009_p11 = scmp.lt.u32.totalorder %s1003_s1, %s88_s15 }
  0x5c   : >> { %p1008_p10 = por %p1007_p9, %p1006_p8 }
  0x5e   : >> { %p1010_p12 = por %p1009_p11, %p1008_p10 }
  0x60   : >> { %p1011_p13 = pnand %p1010_p12, %p1004_p7 }
  0x62   : >> { %1014 = shalt.err (!%p1011_p13)  }
  0x63   : >> { %s1015_s30 = scalar_lea.vmem %s1469_s8, 16  ;;  %s1351_s6 = smov [#allocation3]  }
  0x64   : >> { %p1016_p0 = scmp.ne.s32.totalorder %s1469_s8, %s1015_s30  ;;  %s1017_s16 = sshll.u32 %s1351_s6, 4  ;;  %s1018_s16 = int_to_ptr.vmem [resolvable:$false] %s1017_s16 }
  0x65   : >> { %s1019_s17 = scalar_lea.vmem %s1018_s16, 128  ;;  %p1020_p1 = scmp.lt.s32.totalorder %s1469_s8, %s1018_s16 }
  0x66   : >> { %p1021_p2 = scmp.lt.s32.totalorder %s1019_s17, %s1015_s30 }
  0x68   : >> { %p1022_p4 = por %p1021_p2, %p1020_p1 }
  0x6a   : >> { %p1023_p6 = pnand %p1022_p4, %p1016_p0 }
  0x6c   : >> { %1026 = shalt.err (!%p1023_p6)  }
  0x6d   : >> { %101 = dma.hbm_to_vmem [thread:$0]  %s88_s15, 16, %s1469_s8, [#allocation5 + $0x1] }
  0x6e   : >> { %s1027_s14 = scalar_lea.hbm %s1497_s0, 16  ;;  %p1030_p8 = scmp.lt.u32.totalorder %s1497_s0, %s1881_s4 }
  0x6f   : >> { %p1028_p7 = scmp.ne.s32.totalorder %s1497_s0, %s1027_s14  ;;  %p1031_p9 = scmp.lt.u32.totalorder %s1502_s3, %s1027_s14 }
  0x70   : >> { %p1033_p11 = scmp.lt.u32.totalorder %s1027_s14, %s1497_s0 }
  0x71   : >> { %p1032_p10 = por %p1031_p9, %p1030_p8 }
  0x73   : >> { %p1034_p12 = por %p1033_p11, %p1032_p10 }
  0x75   : >> { %p1035_p13 = pnand %p1034_p12, %p1028_p7 }
  0x77   : >> { %1038 = shalt.err (!%p1035_p13)  }
  0x78   : >> { %s1039_s13 = scalar_lea.vmem %s1471_s10, 16  ;;  %s1352_s27 = smov [#allocation4]  }
  0x79   : >> { %p1040_p0 = scmp.ne.s32.totalorder %s1471_s10, %s1039_s13  ;;  %s1041_s7 = sshll.u32 %s1352_s27, 4  ;;  %s1522_s7 = int_to_ptr.vmem [resolvable:$false] %s1041_s7 }
  0x7a   : >> { %s1525_s8 = scalar_lea.vmem %s1522_s7, 1280  ;;  %p1044_p1 = scmp.lt.s32.totalorder %s1471_s10, %s1522_s7 }
  0x7b   : >> { %p1045_p2 = scmp.lt.s32.totalorder %s1525_s8, %s1039_s13 }
  0x7d   : >> { %p1046_p4 = por %p1045_p2, %p1044_p1 }
  0x7f   : >> { %p1047_p6 = pnand %p1046_p4, %p1040_p0 }
  0x81   : >> { %1050 = shalt.err (!%p1047_p6)  }
  0x82   : >> { %118 = dma.hbm_to_vmem [thread:$0]  %s1497_s0, 16, %s1471_s10, [#allocation5 + $0x2] }
  0x83   : >> { %s813_s15 = sshll.u32 %s1477_s25, 4  ;;  %s743_s1 = scalar_lea.vmem %s1466_s9, 8 [#allocation4] }
  0x84   : >> { %s123_s28 = scalar_lea.hbm %s1881_s4, %s813_s15  ;;  %s132_s30 = sshll.u32 %s743_s1, 4  ;;  %s133_s30 = int_to_ptr.vmem [resolvable:$true] %s132_s30 }
  0x85   : >> { %s136_s6 = sadd.s32 2, %s1457_s29  ;;  %s1051_s16 = scalar_lea.hbm %s123_s28, 16 }
  0x86   : >> { %p1052_p7 = scmp.ne.s32.totalorder %s123_s28, %s1051_s16  ;;  %p1054_p8 = scmp.lt.u32.totalorder %s123_s28, %s1881_s4 }
  0x87   : >> { %p1055_p9 = scmp.lt.u32.totalorder %s1502_s3, %s1051_s16  ;;  %p1057_p11 = scmp.lt.u32.totalorder %s1051_s16, %s123_s28 }
  0x89   : >> { %p1056_p10 = por %p1055_p9, %p1054_p8 }
  0x8b   : >> { %p1058_p12 = por %p1057_p11, %p1056_p10 }
  0x8d   : >> { %p1059_p13 = pnand %p1058_p12, %p1052_p7 }
  0x8f   : >> { %1062 = shalt.err (!%p1059_p13)  }
  0x90   : >> { %s1063_s10 = scalar_lea.vmem %s133_s30, 16  ;;  %p1068_p1 = scmp.lt.s32.totalorder %s133_s30, %s1522_s7 }
  0x91   : >> { %p1064_p0 = scmp.ne.s32.totalorder %s133_s30, %s1063_s10  ;;  %p1069_p2 = scmp.lt.s32.totalorder %s1525_s8, %s1063_s10 }
  0x93   : >> { %p1070_p4 = por %p1069_p2, %p1068_p1 }
  0x95   : >> { %p1071_p6 = pnand %p1070_p4, %p1064_p0 }
  0x97   : >> { %1074 = shalt.err (!%p1071_p6)  }
  0x98   : >> { %135 = dma.hbm_to_vmem [thread:$0]  %s123_s28, 16, %s133_s30, [#allocation5 + $0x2] }
  0x99   : >> { %s137_s25 = sld [smem:[#allocation9 + %s136_s6]]  ;;  %s747_s0 = scalar_lea.vmem %s1466_s9, 16 [#allocation4] }
  0x9a   : >> { %s149_s21 = sshll.u32 %s747_s0, 4  ;;  %s153_s23 = sadd.s32 3, %s1457_s29  ;;  %s150_s21 = int_to_ptr.vmem [resolvable:$true] %s149_s21 }
  0x9b   : >> { %s1546_s13 = sld [smem:[#allocation9 + %s153_s23]]  ;;  %s751_s27 = scalar_lea.vmem %s1466_s9, 24 [#allocation4] }
  0x9c   : >> { %s170_s15 = sadd.s32 4, %s1457_s29  ;;  %s166_s1 = sshll.u32 %s751_s27, 4  ;;  %s1552_s1 = int_to_ptr.vmem [resolvable:$true] %s166_s1 }
  0x9d   : >> { %s1550_s26 = sld [smem:[#allocation9 + %s170_s15]]  ;;  %s755_s20 = scalar_lea.vmem %s1466_s9, 32 [#allocation4] }
  0x9e   : >> { %s183_s30 = sshll.u32 %s755_s20, 4  ;;  %s1558_s30 = int_to_ptr.vmem [resolvable:$true] %s183_s30 }
  0x9f   : >> { %s814_s28 = sshll.u32 %s137_s25, 4 }
  0xa0   : >> { %s140_s6 = scalar_lea.hbm %s1881_s4, %s814_s28 }
  0xa1   : >> { %s1075_s14 = scalar_lea.hbm %s140_s6, 16  ;;  %p1078_p8 = scmp.lt.u32.totalorder %s140_s6, %s1881_s4 }
  0xa2   : >> { %p1076_p7 = scmp.ne.s32.totalorder %s140_s6, %s1075_s14  ;;  %p1079_p9 = scmp.lt.u32.totalorder %s1502_s3, %s1075_s14 }
  0xa3   : >> { %p1081_p11 = scmp.lt.u32.totalorder %s1075_s14, %s140_s6 }
  0xa4   : >> { %p1080_p10 = por %p1079_p9, %p1078_p8 }
  0xa6   : >> { %p1082_p12 = por %p1081_p11, %p1080_p10 }
  0xa8   : >> { %p1083_p13 = pnand %p1082_p12, %p1076_p7 }
  0xaa   : >> { %1086 = shalt.err (!%p1083_p13)  }
  0xab   : >> { %s1087_s25 = scalar_lea.vmem %s150_s21, 16  ;;  %p1092_p1 = scmp.lt.s32.totalorder %s150_s21, %s1522_s7 }
  0xac   : >> { %p1088_p0 = scmp.ne.s32.totalorder %s150_s21, %s1087_s25  ;;  %p1093_p2 = scmp.lt.s32.totalorder %s1525_s8, %s1087_s25 }
  0xae   : >> { %p1094_p4 = por %p1093_p2, %p1092_p1 }
  0xb0   : >> { %p1095_p6 = pnand %p1094_p4, %p1088_p0 }
  0xb2   : >> { %1098 = shalt.err (!%p1095_p6)  }
  0xb3   : >> { %152 = dma.hbm_to_vmem [thread:$0]  %s140_s6, 16, %s150_s21, [#allocation5 + $0x2] }
  0xb4   : >> { %s815_s23 = sshll.u32 %s1546_s13, 4  ;;  %s187_s27 = sadd.s32 5, %s1457_s29 }
  0xb5   : >> { %s157_s28 = scalar_lea.hbm %s1881_s4, %s815_s23  ;;  %s816_s16 = sshll.u32 %s1550_s26, 4 }
  0xb6   : >> { %s1099_s17 = scalar_lea.hbm %s157_s28, 16  ;;  %p1102_p8 = scmp.lt.u32.totalorder %s157_s28, %s1881_s4 }
  0xb7   : >> { %p1100_p7 = scmp.ne.s32.totalorder %s157_s28, %s1099_s17  ;;  %p1103_p9 = scmp.lt.u32.totalorder %s1502_s3, %s1099_s17 }
  0xb8   : >> { %p1105_p11 = scmp.lt.u32.totalorder %s1099_s17, %s157_s28 }
  0xb9   : >> { %p1104_p10 = por %p1103_p9, %p1102_p8 }
  0xbb   : >> { %p1106_p12 = por %p1105_p11, %p1104_p10 }
  0xbd   : >> { %p1107_p13 = pnand %p1106_p12, %p1100_p7 }
  0xbf   : >> { %1110 = shalt.err (!%p1107_p13)  }
  0xc0   : >> { %s1111_s21 = scalar_lea.vmem %s1552_s1, 16  ;;  %p1116_p1 = scmp.lt.s32.totalorder %s1552_s1, %s1522_s7 }
  0xc1   : >> { %p1112_p0 = scmp.ne.s32.totalorder %s1552_s1, %s1111_s21  ;;  %p1117_p2 = scmp.lt.s32.totalorder %s1525_s8, %s1111_s21 }
  0xc3   : >> { %p1118_p4 = por %p1117_p2, %p1116_p1 }
  0xc5   : >> { %p1119_p6 = pnand %p1118_p4, %p1112_p0 }
  0xc7   : >> { %1122 = shalt.err (!%p1119_p6)  }
  0xc8   : >> { %169 = dma.hbm_to_vmem [thread:$0]  %s157_s28, 16, %s1552_s1, [#allocation5 + $0x2] }
  0xc9   : >> { %s174_s6 = scalar_lea.hbm %s1881_s4, %s816_s16  ;;  %s1585_s0 = sld [smem:[#allocation9 + %s187_s27]] }
  0xca   : >> { %s1123_s25 = scalar_lea.hbm %s174_s6, 16  ;;  %p1126_p8 = scmp.lt.u32.totalorder %s174_s6, %s1881_s4 }
  0xcb   : >> { %p1124_p7 = scmp.ne.s32.totalorder %s174_s6, %s1123_s25  ;;  %p1127_p9 = scmp.lt.u32.totalorder %s1502_s3, %s1123_s25 }
  0xcc   : >> { %p1129_p11 = scmp.lt.u32.totalorder %s1123_s25, %s174_s6 }
  0xcd   : >> { %p1128_p10 = por %p1127_p9, %p1126_p8 }
  0xcf   : >> { %p1130_p12 = por %p1129_p11, %p1128_p10 }
  0xd1   : >> { %p1131_p13 = pnand %p1130_p12, %p1124_p7 }
  0xd3   : >> { %1134 = shalt.err (!%p1131_p13)  }
  0xd4   : >> { %s1135_s1 = scalar_lea.vmem %s1558_s30, 16  ;;  %p1140_p1 = scmp.lt.s32.totalorder %s1558_s30, %s1522_s7 }
  0xd5   : >> { %p1136_p0 = scmp.ne.s32.totalorder %s1558_s30, %s1135_s1  ;;  %p1141_p2 = scmp.lt.s32.totalorder %s1525_s8, %s1135_s1 }
  0xd7   : >> { %p1142_p4 = por %p1141_p2, %p1140_p1 }
  0xd9   : >> { %p1143_p6 = pnand %p1142_p4, %p1136_p0 }
  0xdb   : >> { %1146 = shalt.err (!%p1143_p6)  }
  0xdc   : >> { %186 = dma.hbm_to_vmem [thread:$0]  %s174_s6, 16, %s1558_s30, [#allocation5 + $0x2] }
  0xdd   : >> { %s759_s27 = scalar_lea.vmem %s1466_s9, 40 [#allocation4]  ;;  %s204_s20 = sadd.s32 6, %s1457_s29 }
  0xde   : >> { %s200_s28 = sshll.u32 %s759_s27, 4  ;;  %s1599_s16 = sld [smem:[#allocation9 + %s204_s20]]  ;;  %s201_s28 = int_to_ptr.vmem [resolvable:$true] %s200_s28 }
  0xdf   : >> { %s763_s17 = scalar_lea.vmem %s1466_s9, 48 [#allocation4]  ;;  %s221_s10 = sadd.s32 7, %s1457_s29 }
  0xe0   : >> { %s217_s14 = sshll.u32 %s763_s17, 4  ;;  %s817_s21 = sshll.u32 %s1585_s0, 4  ;;  %s1604_s14 = int_to_ptr.vmem [resolvable:$true] %s217_s14 }
  0xe1   : >> { %s191_s25 = scalar_lea.hbm %s1881_s4, %s817_s21  ;;  %s1609_s23 = sld [smem:[#allocation9 + %s221_s10]] }
  0xe2   : >> { %s1147_s30 = scalar_lea.hbm %s191_s25, 16  ;;  %p1150_p8 = scmp.lt.u32.totalorder %s191_s25, %s1881_s4 }
  0xe3   : >> { %p1148_p7 = scmp.ne.s32.totalorder %s191_s25, %s1147_s30  ;;  %p1151_p9 = scmp.lt.u32.totalorder %s1502_s3, %s1147_s30 }
  0xe4   : >> { %p1153_p11 = scmp.lt.u32.totalorder %s1147_s30, %s191_s25 }
  0xe5   : >> { %p1152_p10 = por %p1151_p9, %p1150_p8 }
  0xe7   : >> { %p1154_p12 = por %p1153_p11, %p1152_p10 }
  0xe9   : >> { %p1155_p13 = pnand %p1154_p12, %p1148_p7 }
  0xeb   : >> { %1158 = shalt.err (!%p1155_p13)  }
  0xec   : >> { %s1159_s0 = scalar_lea.vmem %s201_s28, 16  ;;  %p1164_p1 = scmp.lt.s32.totalorder %s201_s28, %s1522_s7 }
  0xed   : >> { %p1160_p0 = scmp.ne.s32.totalorder %s201_s28, %s1159_s0  ;;  %p1165_p2 = scmp.lt.s32.totalorder %s1525_s8, %s1159_s0 }
  0xef   : >> { %p1166_p4 = por %p1165_p2, %p1164_p1 }
  0xf1   : >> { %p1167_p6 = pnand %p1166_p4, %p1160_p0 }
  0xf3   : >> { %1170 = shalt.err (!%p1167_p6)  }
  0xf4   : >> { %203 = dma.hbm_to_vmem [thread:$0]  %s191_s25, 16, %s201_s28, [#allocation5 + $0x2] }
  0xf5   : >> { %s818_s1 = sshll.u32 %s1599_s16, 4  ;;  %s767_s27 = scalar_lea.vmem %s1466_s9, 56 [#allocation4] }
  0xf6   : >> { %s208_s10 = scalar_lea.hbm %s1881_s4, %s818_s1  ;;  %s234_s21 = sshll.u32 %s767_s27, 4  ;;  %s235_s21 = int_to_ptr.vmem [resolvable:$true] %s234_s21 }
  0xf7   : >> { %s1171_s13 = scalar_lea.hbm %s208_s10, 16  ;;  %p1174_p8 = scmp.lt.u32.totalorder %s208_s10, %s1881_s4 }
  0xf8   : >> { %p1172_p7 = scmp.ne.s32.totalorder %s208_s10, %s1171_s13  ;;  %p1175_p9 = scmp.lt.u32.totalorder %s1502_s3, %s1171_s13 }
  0xf9   : >> { %p1177_p11 = scmp.lt.u32.totalorder %s1171_s13, %s208_s10 }
  0xfa   : >> { %p1176_p10 = por %p1175_p9, %p1174_p8 }
  0xfc   : >> { %p1178_p12 = por %p1177_p11, %p1176_p10 }
  0xfe   : >> { %p1179_p13 = pnand %p1178_p12, %p1172_p7 }
 0x100   : >> { %1182 = shalt.err (!%p1179_p13)  }
 0x101   : >> { %s1183_s28 = scalar_lea.vmem %s1604_s14, 16  ;;  %p1188_p1 = scmp.lt.s32.totalorder %s1604_s14, %s1522_s7 }
 0x102   : >> { %p1184_p0 = scmp.ne.s32.totalorder %s1604_s14, %s1183_s28  ;;  %p1189_p2 = scmp.lt.s32.totalorder %s1525_s8, %s1183_s28 }
 0x104   : >> { %p1190_p4 = por %p1189_p2, %p1188_p1 }
 0x106   : >> { %p1191_p6 = pnand %p1190_p4, %p1184_p0 }
 0x108   : >> { %1194 = shalt.err (!%p1191_p6)  }
 0x109   : >> { %220 = dma.hbm_to_vmem [thread:$0]  %s208_s10, 16, %s1604_s14, [#allocation5 + $0x2] }
 0x10a   : >> { %s238_s16 = sadd.s32 8, %s1457_s29  ;;  %s819_s25 = sshll.u32 %s1609_s23, 4 }
 0x10b   : >> { %s239_s6 = sld [smem:[#allocation9 + %s238_s16]]  ;;  %s225_s1 = scalar_lea.hbm %s1881_s4, %s819_s25 }
 0x10c   : >> { %s771_s27 = scalar_lea.vmem %s1466_s9, 64 [#allocation4]  ;;  %s1195_s20 = scalar_lea.hbm %s225_s1, 16 }
 0x10d   : >> { %p1196_p7 = scmp.ne.s32.totalorder %s225_s1, %s1195_s20  ;;  %p1198_p8 = scmp.lt.u32.totalorder %s225_s1, %s1881_s4 }
 0x10e   : >> { %p1199_p9 = scmp.lt.u32.totalorder %s1502_s3, %s1195_s20  ;;  %p1201_p11 = scmp.lt.u32.totalorder %s1195_s20, %s225_s1 }
 0x110   : >> { %p1200_p10 = por %p1199_p9, %p1198_p8 }
 0x112   : >> { %p1202_p12 = por %p1201_p11, %p1200_p10 }
 0x114   : >> { %p1203_p13 = pnand %p1202_p12, %p1196_p7 }
 0x116   : >> { %1206 = shalt.err (!%p1203_p13)  }
 0x117   : >> { %s1207_s14 = scalar_lea.vmem %s235_s21, 16  ;;  %p1212_p1 = scmp.lt.s32.totalorder %s235_s21, %s1522_s7 }
 0x118   : >> { %p1208_p0 = scmp.ne.s32.totalorder %s235_s21, %s1207_s14  ;;  %p1213_p2 = scmp.lt.s32.totalorder %s1525_s8, %s1207_s14 }
 0x11a   : >> { %p1214_p4 = por %p1213_p2, %p1212_p1 }
 0x11c   : >> { %p1215_p6 = pnand %p1214_p4, %p1208_p0 }
 0x11e   : >> { %1218 = shalt.err (!%p1215_p6)  }
 0x11f   : >> { %237 = dma.hbm_to_vmem [thread:$0]  %s225_s1, 16, %s235_s21, [#allocation5 + $0x2] }
 0x120   : >> { %s251_s23 = sshll.u32 %s771_s27, 4  ;;  %s255_s10 = sadd.s32 9, %s1457_s29  ;;  %s252_s23 = int_to_ptr.vmem [resolvable:$true] %s251_s23 }
 0x121   : >> { %s256_s26 = sld [smem:[#allocation9 + %s255_s10]]  ;;  %s775_s30 = scalar_lea.vmem %s1466_s9, 72 [#allocation4] }
 0x122   : >> { %s820_s28 = sshll.u32 %s239_s6, 4  ;;  %s268_s16 = sshll.u32 %s775_s30, 4  ;;  %s269_s16 = int_to_ptr.vmem [resolvable:$true] %s268_s16 }
 0x123   : >> { %s242_s0 = scalar_lea.hbm %s1881_s4, %s820_s28 }
 0x124   : >> { %s1219_s20 = scalar_lea.hbm %s242_s0, 16  ;;  %p1222_p8 = scmp.lt.u32.totalorder %s242_s0, %s1881_s4 }
 0x125   : >> { %p1220_p7 = scmp.ne.s32.totalorder %s242_s0, %s1219_s20  ;;  %p1223_p9 = scmp.lt.u32.totalorder %s1502_s3, %s1219_s20 }
 0x126   : >> { %p1225_p11 = scmp.lt.u32.totalorder %s1219_s20, %s242_s0 }
 0x127   : >> { %p1224_p10 = por %p1223_p9, %p1222_p8 }
 0x129   : >> { %p1226_p12 = por %p1225_p11, %p1224_p10 }
 0x12b   : >> { %p1227_p13 = pnand %p1226_p12, %p1220_p7 }
 0x12d   : >> { %1230 = shalt.err (!%p1227_p13)  }
 0x12e   : >> { %s1231_s29 = scalar_lea.vmem %s252_s23, 16  ;;  %p1236_p1 = scmp.lt.s32.totalorder %s252_s23, %s1522_s7 }
 0x12f   : >> { %p1232_p0 = scmp.ne.s32.totalorder %s252_s23, %s1231_s29  ;;  %p1237_p2 = scmp.lt.s32.totalorder %s1525_s8, %s1231_s29 }
 0x131   : >> { %p1238_p4 = por %p1237_p2, %p1236_p1 }
 0x133   : >> { %p1239_p6 = pnand %p1238_p4, %p1232_p0 }
 0x135   : >> { %1242 = shalt.err (!%p1239_p6)  }
 0x136   : >> { %254 = dma.hbm_to_vmem [thread:$0]  %s242_s0, 16, %s252_s23, [#allocation5 + $0x2] }
 0x137   : >> { %s821_s9 = sshll.u32 %s256_s26, 4 }
 0x138   : >> { %s259_s1 = scalar_lea.hbm %s1881_s4, %s821_s9 }
 0x139   : >> { %s1243_s27 = scalar_lea.hbm %s259_s1, 16  ;;  %p1246_p8 = scmp.lt.u32.totalorder %s259_s1, %s1881_s4 }
 0x13a   : >> { %p1244_p7 = scmp.ne.s32.totalorder %s259_s1, %s1243_s27  ;;  %p1247_p9 = scmp.lt.u32.totalorder %s1502_s3, %s1243_s27 }
 0x13b   : >> { %p1249_p11 = scmp.lt.u32.totalorder %s1243_s27, %s259_s1 }
 0x13c   : >> { %p1248_p10 = por %p1247_p9, %p1246_p8 }
 0x13e   : >> { %p1250_p12 = por %p1249_p11, %p1248_p10 }
 0x140   : >> { %p1251_p13 = pnand %p1250_p12, %p1244_p7 }
 0x142   : >> { %1254 = shalt.err (!%p1251_p13)  }
 0x143   : >> { %s1255_s23 = scalar_lea.vmem %s269_s16, 16  ;;  %p1260_p1 = scmp.lt.s32.totalorder %s269_s16, %s1522_s7 }
 0x144   : >> { %p1256_p0 = scmp.ne.s32.totalorder %s269_s16, %s1255_s23  ;;  %p1261_p2 = scmp.lt.s32.totalorder %s1525_s8, %s1255_s23 }
 0x146   : >> { %p1262_p4 = por %p1261_p2, %p1260_p1 }
 0x148   : >> { %p1263_p6 = pnand %p1262_p4, %p1256_p0 }
 0x14a   : >> { %1266 = shalt.err (!%p1263_p6)  }
 0x14b   : >> { %271 = dma.hbm_to_vmem [thread:$0]  %s259_s1, 16, %s269_s16, [#allocation5 + $0x2] }
 0x14c   : >> { %s69_s24 = sadd.s32 1, %s1341_s24  }
 0x14d   : >> { %p66_p5 = scmp.ge.s32.totalorder %s69_s24, 8  }
 0x14e   : > { %s1343_s3 = smov (%p66_p5), 0  }
 0x14f   : > { %68 = sbr.rel (!%p66_p5) target bundleno = 52 (0x34), region = 136 }
 0x156 LB: >> { %1317 = dma.done.wait [#allocation5], 16  ;;  %s1345_s3 = sphi %s1343_s3, %s277_s3  }
 0x157   : >> { %1318 = vsyncadd [#allocation5], 4294967280 }
 0x158   : >> { %1319 = dma.done.wait [#allocation5 + $0x1], 16 }
 0x159   : >> { %1320 = vsyncadd [#allocation5 + $0x1], 4294967280 }
 0x15a   : >> { %1321 = dma.done.wait [#allocation5 + $0x2], 160 }
 0x15b   : >> { %1322 = vsyncadd [#allocation5 + $0x2], 4294967136  ;;  %s277_s3 = sadd.s32 1, %s1345_s3  }
 0x15c   : >> { %p274_p7 = scmp.ge.s32.totalorder %s277_s3, 8  }
 0x15d   : > { %v304_v0 = vld [vmem:[#allocation2] sm:$0xff] (%p274_p7)  ;;  %v375_v1 = vld [vmem:[#allocation4 + $0x8] sm:$0xff] (%p274_p7)  ;;  %v342_v2 = vld [vmem:[#allocation4] sm:$0xff] (%p274_p7)  ;;  %v306_v47 = vlaneseq (%p274_p7)  ;;  %s1895_s24 = sshll.u32 (%p274_p7), %s1337_s12, 3  ;;  %vm330_vm2 = vcmask (%p274_p7), 7168   ;;  %s823_s17 = sshll.u32 (%p274_p7), %s1337_s12, 7 }
 0x15e   : > { %276 = sbr.rel (!%p274_p7) target bundleno = 342 (0x156), region = 147  ;;  %v376_v3 = vmul.f32 (%p274_p7), %v375_v1, %v304_v0  ;;  %v343_v4 = vmul.f32 (%p274_p7), %v342_v2, %v304_v0  ;;  %v408_v5 = vld [vmem:[#allocation4 + $0x10] sm:$0xff] (%p274_p7)  ;;  %v305_v6 = vld [vmem:[#allocation3] sm:$0xff] (%p274_p7)  ;;  %v474_v9 = vld [vmem:[#allocation4 + $0x20] sm:$0xff] (%p274_p7)  ;;  %v308_v62 = vstv (%p274_p7), %s1895_s24  ;;  %s1910_s13 = scalar_lea.vmem (%p274_p7), [#allocation10], %s1443_s22 }
 0x15f   : > { %v409_v7 = vmul.f32 (%p274_p7), %v408_v5, %v304_v0  ;;  %v311_v8 = vmul.f32 (%p274_p7), %v305_v6, %v304_v0  ;;  %v441_v10 = vld [vmem:[#allocation4 + $0x18] sm:$0xff] (%p274_p7)  ;;  %v475_v11 = vmul.f32 (%p274_p7), %v474_v9, %v304_v0  ;;  %v540_v13 = vld [vmem:[#allocation4 + $0x30] sm:$0xff] (%p274_p7)  ;;  %v507_v14 = vld [vmem:[#allocation4 + $0x28] sm:$0xff] (%p274_p7)  ;;  %v307_v57 = vshrl.u32 (%p274_p7), %v306_v47, 7  ;;  %s687_s29 = sshll.u32 (%p274_p7), %s1910_s13, 4  ;;  %s1836_s1 = scalar_lea.hbm (%p274_p7), %s1882_s5, %s823_s17  ;;  %s1838_s29 = int_to_ptr.vmem [resolvable:$true] %s687_s29 }
 0x160   : > { %377 = vadd.xlane.f32.xlu1 (%p274_p7), %v376_v3  ;;  %344 = vadd.xlane.f32.xlu0 (%p274_p7), %v343_v4  ;;  %v442_v12 = vmul.f32 (%p274_p7), %v441_v10, %v304_v0  ;;  %v541_v15 = vmul.f32 (%p274_p7), %v540_v13, %v304_v0  ;;  %v508_v16 = vmul.f32 (%p274_p7), %v507_v14, %v304_v0  ;;  %v606_v17 = vld [vmem:[#allocation4 + $0x40] sm:$0xff] (%p274_p7)  ;;  %v573_v18 = vld [vmem:[#allocation4 + $0x38] sm:$0xff] (%p274_p7)  ;;  %v639_v21 = vld [vmem:[#allocation4 + $0x48] sm:$0xff] (%p274_p7)  ;;  %s1911_s27 = smov (%p274_p7), %s1910_s13  ;;  %s1912_s14 = sand.u32 (%p274_p7), 1, %s1333_s11  }
 0x161   : > { %v607_v19 = vmul.f32 (%p274_p7), %v606_v17, %v304_v0  ;;  %v574_v20 = vmul.f32 (%p274_p7), %v573_v18, %v304_v0  ;;  %v640_v22 = vmul.f32 (%p274_p7), %v639_v21, %v304_v0  ;;  %s674_s10 = scalar_lea.sflag (%p274_p7), [#allocation11], %s1912_s14  ;;  %s1267_s23 = scalar_lea.vmem (%p274_p7), %s1838_s29, 128 }
 0x162   : > { %p1268_p5 = scmp.ne.s32.totalorder (%p274_p7), %s1838_s29, %s1267_s23  ;;  %s1353_s3 = smov (%p274_p7), [#allocation10]  }
 0x163   : > { %s1271_s24 = sshll.u32 (%p274_p7), %s1353_s3, 4  ;;  %s1272_s24 = int_to_ptr.vmem [resolvable:$false] %s1271_s24 }
 0x164   : > { %410 = vadd.xlane.f32.xlu1 (%p274_p7), %v409_v7  ;;  %312 = vadd.xlane.f32.xlu0 (%p274_p7), %v311_v8  ;;  %v1690_v7 = vadd.s32 (%p274_p7), %v308_v62, %v307_v57  ;;  %p1269_p8 = pnand (%p274_p7), %p1268_p5, %p1430_p3  ;;  %p1274_p10 = scmp.lt.s32.totalorder (%p274_p7), %s1838_s29, %s1272_s24 }
 0x166   : > { %vm310_vm0 = vcmp.lt.s32.totalorder %v1690_v7, 16  ;;  %p1270_p9 = pneg %p1269_p8 }
 0x168   : > { %476 = vadd.xlane.f32.xlu1 %v475_v11  ;;  %443 = vadd.xlane.f32.xlu0 %v442_v12 }
 0x16c   : > { %542 = vadd.xlane.f32.xlu1 %v541_v15  ;;  %509 = vadd.xlane.f32.xlu0 %v508_v16 }
 0x170   : > { %608 = vadd.xlane.f32.xlu1 %v607_v19  ;;  %575 = vadd.xlane.f32.xlu0 %v574_v20 }
 0x174   : > { %641 = vadd.xlane.f32.xlu0 %v640_v22 }
 0x1ed   : > { %v378_v23 = vpop.xlane.xlu1 %377  ;;  %v345_v24 = vpop.xlane.xlu0 %344 }
 0x1ee   : > { %v379_v25 = vsub.f32 0.0, %v378_v23  ;;  %v346_v26 = vsub.f32 0.0, %v345_v24 }
 0x1f0   : > { %v381_v27 = vand.u32 2147483647, %v379_v25  ;;  %v348_v28 = vand.u32 2147483647, %v346_v26  ;;  %v1686_v4 = vmin.f32 %v379_v25, 0.0  ;;  %v1692_v9 = vmin.f32 %v346_v26, 0.0 }
 0x1f1   : > { %v411_v29 = vpop.xlane.xlu1 %410  ;;  %v1667_v30 = vpop.xlane.xlu0 %312 }
 0x1f2   : > { %v382_v31 = vsub.f32 0.0, %v381_v27  ;;  %v349_v32 = vsub.f32 0.0, %v348_v28  ;;  %v412_v33 = vsub.f32 0.0, %v411_v29  ;;  %v315_v34 = vand.u32 2147483647, %v1667_v30 }
 0x1f3   : > { %v314_v10 = vmin.f32 %v1667_v30, 0.0 }
 0x1f4   : > { %v383_v35 = vmul.f32 1.442695, %v382_v31  ;;  %v350_v36 = vmul.f32 1.442695, %v349_v32  ;;  %v414_v37 = vand.u32 2147483647, %v412_v33 }
 0x1f5   : > { %v316_v38 = vsub.f32 0.0, %v315_v34  ;;  %v477_v39 = vpop.xlane.xlu1 %476  ;;  %v1670_v40 = vpop.xlane.xlu0 %443  ;;  %v1698_v19 = vmin.f32 %v412_v33, 0.0 }
 0x1f6   : > { %901 = vpow2.f32 %v383_v35  ;;  %v478_v41 = vsub.f32 0.0, %v477_v39  ;;  %v445_v42 = vsub.f32 0.0, %v1670_v40  ;;  %v415_v43 = vsub.f32 0.0, %v414_v37 }
 0x1f7   : > { %903 = vpow2.f32 %v350_v36  ;;  %v317_v44 = vmul.f32 1.442695, %v316_v38 }
 0x1f8   : > { %v480_v45 = vand.u32 2147483647, %v478_v41  ;;  %v447_v46 = vand.u32 2147483647, %v445_v42  ;;  %v416_v48 = vmul.f32 1.442695, %v415_v43 }
 0x1f9   : > { %905 = vpow2.f32 %v317_v44  ;;  %v1673_v49 = vpop.xlane.xlu1 %542  ;;  %v1675_v50 = vpop.xlane.xlu0 %509  ;;  %v1700_v20 = vmin.f32 %v478_v41, 0.0  ;;  %v1706_v33 = vmin.f32 %v445_v42, 0.0 }
 0x1fa   : > { %v481_v51 = vsub.f32 0.0, %v480_v45  ;;  %v448_v52 = vsub.f32 0.0, %v447_v46  ;;  %v544_v53 = vsub.f32 0.0, %v1673_v49  ;;  %v511_v54 = vsub.f32 0.0, %v1675_v50 }
 0x1fb   : > { %907 = vpow2.f32 %v416_v48 }
 0x1fc   : > { %v482_v55 = vmul.f32 1.442695, %v481_v51  ;;  %v449_v56 = vmul.f32 1.442695, %v448_v52  ;;  %v546_v58 = vand.u32 2147483647, %v544_v53 }
 0x1fd   : > { %v513_v59 = vand.u32 2147483647, %v511_v54  ;;  %v609_v60 = vpop.xlane.xlu1 %608  ;;  %v1679_v61 = vpop.xlane.xlu0 %575  ;;  %v1708_v41 = vmin.f32 %v544_v53, 0.0  ;;  %v1710_v43 = vmin.f32 %v511_v54, 0.0 }
 0x1fe   : > { %909 = vpow2.f32 %v482_v55  ;;  %v610_v63 = vsub.f32 0.0, %v609_v60  ;;  %v577_v0 = vsub.f32 0.0, %v1679_v61  ;;  %v547_v1 = vsub.f32 0.0, %v546_v58 }
 0x1ff   : > { %911 = vpow2.f32 %v449_v56  ;;  %v514_v2 = vsub.f32 0.0, %v513_v59 }
 0x200   : > { %v1684_v3 = vpop.eup %901  ;;  %v612_v5 = vand.u32 2147483647, %v610_v63  ;;  %v579_v6 = vand.u32 2147483647, %v577_v0  ;;  %v548_v11 = vmul.f32 1.442695, %v547_v1 }
 0x201   : > { %v904_v8 = vpop.eup %903  ;;  %v515_v12 = vmul.f32 1.442695, %v514_v2  ;;  %v1695_v13 = vpop.xlane.xlu0 %641  ;;  %v388_v24 = vmul.f32 -0.5, %v1684_v3  ;;  %v385_v28 = vadd.f32 1.0, %v1684_v3  ;;  %v1712_v44 = vmin.f32 %v610_v63, 0.0 }
 0x202   : > { %v613_v14 = vsub.f32 0.0, %v612_v5  ;;  %v580_v15 = vsub.f32 0.0, %v579_v6  ;;  %v643_v16 = vsub.f32 0.0, %v1695_v13  ;;  %v352_v17 = vadd.f32 1.0, %v904_v8 }
 0x203   : > { %v906_v18 = vpop.eup %905  ;;  %913 = vpow2.f32 %v548_v11  ;;  %v355_v21 = vmul.f32 -0.5, %v904_v8  ;;  %v358_v27 = vand.u32 2147483647, %v904_v8  ;;  %v389_v39 = vadd.f32 1.0, %v388_v24 }
 0x204   : > { %915 = vpow2.f32 %v515_v12  ;;  %v614_v22 = vmul.f32 1.442695, %v613_v14  ;;  %v581_v23 = vmul.f32 1.442695, %v580_v15  ;;  %v645_v26 = vand.u32 2147483647, %v643_v16 }
 0x205   : > { %v908_v25 = vpop.eup %907  ;;  %917 = vlog2.f32 %v352_v17  ;;  %v356_v29 = vadd.f32 1.0, %v355_v21  ;;  %v319_v31 = vadd.f32 1.0, %v906_v18  ;;  %v322_v32 = vmul.f32 -0.5, %v906_v18 }
 0x206   : > { %919 = vpow2.f32 %v614_v22  ;;  %v646_v34 = vsub.f32 0.0, %v645_v26  ;;  %v418_v35 = vadd.f32 1.0, %v908_v25  ;;  %v325_v37 = vand.u32 2147483647, %v906_v18 }
 0x207   : > { %921 = vpow2.f32 %v581_v23  ;;  %v421_v38 = vmul.f32 -0.5, %v908_v25  ;;  %v357_v42 = vmul.f32 %v904_v8, %v356_v29  ;;  %vm1715_vm1 = vcmp.lt.f32.partialorder %v358_v27, 0.0004427343 }
 0x208   : > { %v910_v36 = vpop.eup %909  ;;  %923 = vlog2.f32 %v319_v31  ;;  %v323_v46 = vadd.f32 1.0, %v322_v32  ;;  %v647_v47 = vmul.f32 1.442695, %v646_v34  ;;  %v424_v48 = vand.u32 2147483647, %v908_v25 }
 0x209   : > { %v912_v40 = vpop.eup %911  ;;  %925 = vlog2.f32 %v418_v35  ;;  %v484_v49 = vadd.f32 1.0, %v910_v36  ;;  %v487_v50 = vmul.f32 -0.5, %v910_v36  ;;  %vm1719_vm3 = vcmp.lt.f32.partialorder %v325_v37, 0.0004427343 }
 0x20a   : > { %927 = vlog2.f32 %v385_v28  ;;  %v422_v52 = vadd.f32 1.0, %v421_v38  ;;  %v390_v53 = vmul.f32 %v1684_v3, %v389_v39  ;;  %v391_v54 = vand.u32 2147483647, %v1684_v3 }
 0x20b   : > { %v451_v55 = vadd.f32 1.0, %v912_v40  ;;  %929 = vlog2.f32 %v484_v49  ;;  %v488_v57 = vadd.f32 1.0, %v487_v50  ;;  %v490_v58 = vand.u32 2147483647, %v910_v36 }
 0x20c   : > { %v454_v59 = vmul.f32 -0.5, %v912_v40  ;;  %v324_v62 = vmul.f32 %v906_v18, %v323_v46  ;;  %vm1727_vm4 = vcmp.lt.f32.partialorder %v424_v48, 0.0004427343  ;;  %v457_v3 = vand.u32 2147483647, %v912_v40 }
 0x20d   : > { %v914_v56 = vpop.eup %913  ;;  %931 = vlog2.f32 %v451_v55  ;;  %v423_v17 = vmul.f32 %v908_v25, %v422_v52  ;;  %vm1736_vm5 = vcmp.lt.f32.partialorder %v391_v54, 0.0004427343  ;;  %v489_v21 = vmul.f32 %v910_v36, %v488_v57 }
 0x20e   : > { %v1725_v60 = vpop.eup %915  ;;  %v550_v63 = vadd.f32 1.0, %v914_v56  ;;  %v553_v1 = vmul.f32 -0.5, %v914_v56  ;;  %933 = vpow2.f32 %v647_v47  ;;  %v455_v6 = vadd.f32 1.0, %v454_v59 }
 0x20f   : > { %v918_v2 = vpop.eup %917  ;;  %v556_v12 = vand.u32 2147483647, %v914_v56  ;;  %v517_v14 = vadd.f32 1.0, %v1725_v60  ;;  %vm1740_vm6 = vcmp.lt.f32.partialorder %v490_v58, 0.0004427343  ;;  %v520_v37 = vmul.f32 -0.5, %v1725_v60 }
 0x210   : > { %v1731_v8 = vpop.eup %919  ;;  %v354_v11 = vmul.f32 0.6931472, %v918_v2  ;;  %935 = vlog2.f32 %v550_v63  ;;  %v554_v26 = vadd.f32 1.0, %v553_v1  ;;  %v456_v31 = vmul.f32 %v912_v40, %v455_v6 }
 0x211   : > { %v1734_v15 = vpop.eup %921  ;;  %937 = vlog2.f32 %v517_v14  ;;  %v616_v27 = vadd.f32 1.0, %v1731_v8  ;;  %vm1748_vm7 = vcmp.lt.f32.partialorder %v457_v3, 0.0004427343  ;;  %vm1752_vm8 = vcmp.lt.f32.partialorder %v556_v12, 0.0004427343 }
 0x212   : > { %v924_v23 = vpop.eup %923  ;;  %v360_v24 = vsel %vm1715_vm1, %v357_v42, %v354_v11  ;;  %v523_v40 = vand.u32 2147483647, %v1725_v60  ;;  %v555_v47 = vmul.f32 %v914_v56, %v554_v26  ;;  %v619_v51 = vmul.f32 -0.5, %v1731_v8 }
 0x213   : > { %v926_v28 = vpop.eup %925  ;;  %v361_v25 = vsub.f32 %v1692_v9, %v360_v24  ;;  %v321_v29 = vmul.f32 0.6931472, %v924_v23  ;;  %939 = vlog2.f32 %v616_v27  ;;  %v583_v52 = vadd.f32 1.0, %v1734_v15 }
 0x214   : > { %v928_v34 = vpop.eup %927  ;;  %v420_v35 = vmul.f32 0.6931472, %v926_v28  ;;  %v521_v57 = vadd.f32 1.0, %v520_v37  ;;  %v622_v1 = vand.u32 2147483647, %v1731_v8  ;;  %v620_v3 = vadd.f32 1.0, %v619_v51 }
 0x215   : > { %v362_v38 = vsel %vm310_vm0, %v361_v25, 0.0  ;;  %v327_v9 = vsel %vm1719_vm3, %v324_v62, %v321_v29  ;;  %v387_v39 = vmul.f32 0.6931472, %v928_v34  ;;  %v930_v48 = vpop.eup %929  ;;  %941 = vlog2.f32 %v583_v52 }
 0x216   : > { %v363_v42 = vsel %vm330_vm2, %v362_v38, 0.0  ;;  %v328_v45 = vsub.f32 %v314_v10, %v327_v9  ;;  %v426_v46 = vsel %vm1727_vm4, %v423_v17, %v420_v35  ;;  %v486_v55 = vmul.f32 0.6931472, %v930_v48 }
 0x217   : > { %364 = vadd.xlane.f32.xlu0 %v363_v42  ;;  %v427_v49 = vsub.f32 %v1698_v19, %v426_v46  ;;  %v393_v50 = vsel %vm1736_vm5, %v390_v53, %v387_v39  ;;  %v932_v54 = vpop.eup %931  ;;  %v522_v14 = vmul.f32 %v1725_v60, %v521_v57  ;;  %v586_v17 = vmul.f32 -0.5, %v1734_v15 }
 0x218   : > { %v329_v30 = vsel %vm310_vm0, %v328_v45, 0.0  ;;  %v394_v10 = vsub.f32 %v1686_v4, %v393_v50  ;;  %v1775_v56 = vpop.eup %933  ;;  %v453_v53 = vmul.f32 0.6931472, %v932_v54  ;;  %v492_v4 = vsel %vm1740_vm6, %v489_v21, %v486_v55 }
 0x219   : > { %v331_v58 = vsel %vm330_vm2, %v329_v30, 0.0  ;;  %v428_v19 = vsel %vm310_vm0, %v427_v49, 0.0  ;;  %v493_v2 = vsub.f32 %v1700_v20, %v492_v4  ;;  %v649_v18 = vadd.f32 1.0, %v1775_v56 }
 0x21a   : > { %v936_v59 = vpop.eup %935  ;;  %332 = vadd.xlane.f32.xlu1 %v331_v58  ;;  %v429_v62 = vsel %vm330_vm2, %v428_v19, 0.0  ;;  %v395_v63 = vsel %vm310_vm0, %v394_v10, 0.0  ;;  %v459_v5 = vsel %vm1748_vm7, %v456_v31, %v453_v53  ;;  %vm524_vm9 = vcmp.lt.f32.partialorder %v523_v40, 0.0004427343 }
 0x21b   : > { %430 = vadd.xlane.f32.xlu0 %v429_v62  ;;  %v552_v6 = vmul.f32 0.6931472, %v936_v59  ;;  %v938_v11 = vpop.eup %937  ;;  %v460_v12 = vsub.f32 %v1706_v33, %v459_v5  ;;  %v396_v21 = vsel %vm330_vm2, %v395_v63, 0.0  ;;  %v494_v22 = vsel %vm310_vm0, %v493_v2, 0.0 }
 0x21c   : > { %v519_v23 = vmul.f32 0.6931472, %v938_v11  ;;  %v495_v26 = vsel %vm330_vm2, %v494_v22, 0.0  ;;  %v621_v25 = vmul.f32 %v1731_v8, %v620_v3  ;;  %vm623_vm10 = vcmp.lt.f32.partialorder %v622_v1, 0.0004427343 }
 0x21d   : > { %v558_v20 = vsel %vm1752_vm8, %v555_v47, %v552_v6  ;;  %v940_v24 = vpop.eup %939  ;;  %v461_v33 = vsel %vm310_vm0, %v460_v12, 0.0  ;;  %v587_v32 = vadd.f32 1.0, %v586_v17  ;;  %943 = vlog2.f32 %v649_v18 }
 0x21e   : > { %397 = vadd.xlane.f32.xlu1 %v396_v21  ;;  %v559_v60 = vsub.f32 %v1708_v41, %v558_v20  ;;  %v525_v27 = vsel %vm524_vm9, %v522_v14, %v519_v23  ;;  %v618_v28 = vmul.f32 0.6931472, %v940_v24  ;;  %v462_v34 = vsel %vm330_vm2, %v461_v33, 0.0 }
 0x21f   : > { %496 = vadd.xlane.f32.xlu0 %v495_v26  ;;  %v526_v31 = vsub.f32 %v1710_v43, %v525_v27  ;;  %v589_v41 = vand.u32 2147483647, %v1734_v15  ;;  %v942_v38 = vpop.eup %941  ;;  %v652_v9 = vmul.f32 -0.5, %v1775_v56  ;;  %v588_v40 = vmul.f32 %v1734_v15, %v587_v32 }
 0x220   : > { %v560_v29 = vsel %vm310_vm0, %v559_v60, 0.0  ;;  %v624_v36 = vsel %vm623_vm10, %v621_v25, %v618_v28  ;;  %v585_v39 = vmul.f32 0.6931472, %v942_v38  ;;  %v578_v42 = vmin.f32 %v577_v0, 0.0 }
 0x221   : > { %v561_v35 = vsel %vm330_vm2, %v560_v29, 0.0  ;;  %v527_v37 = vsel %vm310_vm0, %v526_v31, 0.0  ;;  %v625_v8 = vsub.f32 %v1712_v44, %v624_v36  ;;  %vm590_vm11 = vcmp.lt.f32.partialorder %v589_v41, 0.0004427343 }
 0x222   : > { %463 = vadd.xlane.f32.xlu1 %v462_v34  ;;  %v528_v45 = vsel %vm330_vm2, %v527_v37, 0.0  ;;  %v591_v44 = vsel %vm590_vm11, %v588_v40, %v585_v39  ;;  %v653_v48 = vadd.f32 1.0, %v652_v9  ;;  %v655_v49 = vand.u32 2147483647, %v1775_v56 }
 0x223   : > { %562 = vadd.xlane.f32.xlu0 %v561_v35  ;;  %v626_v43 = vsel %vm310_vm0, %v625_v8, 0.0  ;;  %v592_v47 = vsub.f32 %v578_v42, %v591_v44  ;;  %v644_v52 = vmin.f32 %v643_v16, 0.0 }
 0x224   : > { %v627_v46 = vsel %vm330_vm2, %v626_v43, 0.0  ;;  %v654_v0 = vmul.f32 %v1775_v56, %v653_v48  ;;  %vm656_vm12 = vcmp.lt.f32.partialorder %v655_v49, 0.0004427343 }
 0x225   : > { %v593_v50 = vsel %vm310_vm0, %v592_v47, 0.0 }
 0x226   : > { %529 = vadd.xlane.f32.xlu1 %v528_v45  ;;  %v594_v15 = vsel %vm330_vm2, %v593_v50, 0.0 }
 0x227   : > { %628 = vadd.xlane.f32.xlu0 %v627_v46  ;;  %v944_v51 = vpop.eup %943 }
 0x228   : > { %v651_v61 = vmul.f32 0.6931472, %v944_v51 }
 0x22a   : > { %595 = vadd.xlane.f32.xlu1 %v594_v15  ;;  %v657_v54 = vsel %vm656_vm12, %v654_v0, %v651_v61 }
 0x22b   : > { %v658_v30 = vsub.f32 %v644_v52, %v657_v54 }
 0x22d   : > { %v659_v10 = vsel %vm310_vm0, %v658_v30, 0.0 }
 0x22e   : > { %v660_v55 = vsel %vm330_vm2, %v659_v10, 0.0 }
 0x22f   : > { %661 = vadd.xlane.f32.xlu1 %v660_v55 }
 0x2a4   : > { %v365_v57 = vpop.xlane.xlu0 %364 }
 0x2a5   : > { %v366_v58 = vrot.slane %v365_v57, 4 }
 0x2a7   : > { %v367_v19 = vadd.f32 %v366_v58, %v365_v57  ;;  %v333_v53 = vpop.xlane.xlu1 %332 }
 0x2a8   : > { %v334_v59 = vrot.slane %v333_v53, 4  ;;  %v431_v62 = vpop.xlane.xlu0 %430 }
 0x2a9   : > { %v368_v63 = vrot.slane %v367_v19, 2  ;;  %v432_v56 = vrot.slane %v431_v62, 4 }
 0x2aa   : > { %v335_v4 = vadd.f32 %v334_v59, %v333_v53 }
 0x2ab   : > { %v433_v13 = vadd.f32 %v432_v56, %v431_v62  ;;  %v398_v16 = vpop.xlane.xlu1 %397  ;;  %v369_v1 = vadd.f32 %v368_v63, %v367_v19 }
 0x2ac   : > { %v336_v2 = vrot.slane %v335_v4, 2  ;;  %v399_v5 = vrot.slane %v398_v16, 4  ;;  %v497_v6 = vpop.xlane.xlu0 %496 }
 0x2ad   : > { %v434_v7 = vrot.slane %v433_v13, 2  ;;  %v498_v3 = vrot.slane %v497_v6, 4  ;;  %v370_v18 = vrot.slane %v369_v1, 1 }
 0x2ae   : > { %v400_v11 = vadd.f32 %v399_v5, %v398_v16  ;;  %v337_v12 = vadd.f32 %v336_v2, %v335_v4 }
 0x2af   : > { %v499_v14 = vadd.f32 %v498_v3, %v497_v6  ;;  %v464_v17 = vpop.xlane.xlu1 %463  ;;  %v435_v21 = vadd.f32 %v434_v7, %v433_v13  ;;  %v371_v31 = vadd.f32 %v370_v18, %v369_v1 }
 0x2b0   : > { %v401_v22 = vrot.slane %v400_v11, 2  ;;  %v465_v20 = vrot.slane %v464_v17, 4  ;;  %v563_v23 = vpop.xlane.xlu0 %562  ;;  %v338_v24 = vrot.slane %v337_v12, 1 }
 0x2b1   : > { %v500_v26 = vrot.slane %v499_v14, 2  ;;  %v564_v33 = vrot.slane %v563_v23, 4  ;;  %v436_v32 = vrot.slane %v435_v21, 1 }
 0x2b2   : > { %v466_v60 = vadd.f32 %v465_v20, %v464_v17  ;;  %v339_v27 = vadd.f32 %v338_v24, %v337_v12  ;;  %v402_v28 = vadd.f32 %v401_v22, %v400_v11 }
 0x2b3   : > { %v565_v25 = vadd.f32 %v564_v33, %v563_v23  ;;  %v530_v29 = vpop.xlane.xlu1 %529  ;;  %v501_v34 = vadd.f32 %v500_v26, %v499_v14  ;;  %v437_v42 = vadd.f32 %v436_v32, %v435_v21 }
 0x2b4   : > { %v467_v35 = vrot.slane %v466_v60, 2  ;;  %v531_v36 = vrot.slane %v530_v29, 4  ;;  %829 = vpush %v339_v27  ;;  %v629_v41 = vpop.xlane.xlu0 %628  ;;  %v403_v37 = vrot.slane %v402_v28, 1 }
 0x2b5   : > { %v566_v8 = vrot.slane %v565_v25, 2  ;;  %831 = vpush %v371_v31  ;;  %v630_v38 = vrot.slane %v629_v41, 4  ;;  %v502_v45 = vrot.slane %v501_v34, 1 }
 0x2b6   : > { %v532_v9 = vadd.f32 %v531_v36, %v530_v29  ;;  %v404_v43 = vadd.f32 %v403_v37, %v402_v28  ;;  %v468_v39 = vadd.f32 %v467_v35, %v466_v60 }
 0x2b7   : > { %v631_v40 = vadd.f32 %v630_v38, %v629_v41  ;;  %v567_v46 = vadd.f32 %v566_v8, %v565_v25  ;;  %v596_v47 = vpop.xlane.xlu1 %595  ;;  %v503_v0 = vadd.f32 %v502_v45, %v501_v34 }
 0x2b8   : > { %v533_v44 = vrot.slane %v532_v9, 2  ;;  %833 = vpush %v404_v43  ;;  %v469_v48 = vrot.slane %v468_v39, 1  ;;  %v597_v50 = vrot.slane %v596_v47, 4 }
 0x2b9   : > { %v632_v49 = vrot.slane %v631_v40, 2  ;;  %835 = vpush %v437_v42  ;;  %v568_v52 = vrot.slane %v567_v46, 1 }
 0x2ba   : > { %v470_v51 = vadd.f32 %v469_v48, %v468_v39  ;;  %v534_v15 = vadd.f32 %v533_v44, %v532_v9  ;;  %v598_v61 = vadd.f32 %v597_v50, %v596_v47 }
 0x2bb   : > { %v633_v54 = vadd.f32 %v632_v49, %v631_v40  ;;  %v569_v58 = vadd.f32 %v568_v52, %v567_v46 }
 0x2bc   : > { %837 = vpush %v470_v51  ;;  %v535_v30 = vrot.slane %v534_v15, 1  ;;  %v599_v10 = vrot.slane %v598_v61, 2  ;;  %v662_v57 = vpop.xlane.xlu1 %661 }
 0x2bd   : > { %839 = vpush %v503_v0  ;;  %v663_v53 = vrot.slane %v662_v57, 4  ;;  %v634_v59 = vrot.slane %v633_v54, 1 }
 0x2be   : > { %v536_v55 = vadd.f32 %v535_v30, %v534_v15  ;;  %v600_v19 = vadd.f32 %v599_v10, %v598_v61 }
 0x2bf   : > { %v664_v63 = vadd.f32 %v663_v53, %v662_v57  ;;  %v635_v13 = vadd.f32 %v634_v59, %v633_v54 }
 0x2c0   : > { %841 = vpush %v536_v55  ;;  %v601_v62 = vrot.slane %v600_v19, 1 }
 0x2c1   : > { %843 = vpush %v569_v58  ;;  %v665_v4 = vrot.slane %v664_v63, 2 }
 0x2c2   : > { %v602_v56 = vadd.f32 %v601_v62, %v600_v19 }
 0x2c3   : > { %v666_v16 = vadd.f32 %v665_v4, %v664_v63 }
 0x2c4   : > { %845 = vpush %v602_v56 }
 0x2c5   : > { %847 = vpush %v635_v13  ;;  %v667_v1 = vrot.slane %v666_v16, 1 }
 0x2c7   : > { %v668_v2 = vadd.f32 %v667_v1, %v666_v16 }
 0x2c9   : > { %849 = vpush %v668_v2 }
 0x2e5   : > { %s830_s7 = spop %829 }
 0x2e6   : > { %v341_v5 = vstv %s830_s7  ;;  %s832_s8 = spop %831  ;;  %s1273_s7 = scalar_lea.vmem %s1272_s24, 256 }
 0x2e7   : > { %v373_v6 = vstv %s832_s8  ;;  %p1275_p11 = scmp.lt.s32.totalorder %s1273_s7, %s1267_s23 }
 0x2e8   : > { %v374_v7 = vadd.f32 %v373_v6, %v341_v5 }
 0x2e9   : > { %s834_s26 = spop %833  ;;  %p1276_p12 = por %p1275_p11, %p1274_p10 }
 0x2ea   : > { %v406_v3 = vstv %s834_s26  ;;  %s836_s30 = spop %835 }
 0x2eb   : > { %v407_v11 = vadd.f32 %v406_v3, %v374_v7  ;;  %v439_v12 = vstv %s836_s30  ;;  %p1277_p13 = pnand %p1276_p12, %p1270_p9 }
 0x2ed   : > { %v440_v14 = vadd.f32 %v439_v12, %v407_v11  ;;  %s838_s28 = spop %837 }
 0x2ee   : > { %v472_v17 = vstv %s838_s28  ;;  %s840_s16 = spop %839 }
 0x2ef   : > { %v473_v18 = vadd.f32 %v472_v17, %v440_v14  ;;  %v505_v21 = vstv %s840_s16 }
 0x2f1   : > { %v506_v22 = vadd.f32 %v505_v21, %v473_v18  ;;  %s842_s25 = spop %841 }
 0x2f2   : > { %v538_v20 = vstv %s842_s25  ;;  %s844_s15 = spop %843 }
 0x2f3   : > { %v539_v23 = vadd.f32 %v538_v20, %v506_v22  ;;  %v571_v24 = vstv %s844_s15 }
 0x2f5   : > { %v572_v26 = vadd.f32 %v571_v24, %v539_v23  ;;  %s846_s0 = spop %845 }
 0x2f6   : > { %v604_v33 = vstv %s846_s0  ;;  %s848_s20 = spop %847 }
 0x2f7   : > { %v605_v60 = vadd.f32 %v604_v33, %v572_v26  ;;  %v637_v27 = vstv %s848_s20 }
 0x2f9   : > { %v638_v28 = vadd.f32 %v637_v27, %v605_v60 }
 0x2fa   : > { %s850_s9 = spop %849 }
 0x2fb   : > { %v670_v25 = vstv %s850_s9 }
 0x2fc   : > { %v671_v29 = vadd.f32 %v670_v25, %v638_v28 }
 0x2fe   : > { %672 = vst [vmem:[%s1911_s27] sm:$0xff] %v671_v29 }
 0x2ff   : > { %1280 = shalt.err (!%p1277_p13)
}
 0x300   : > { %s1281_s22 = scalar_lea.hbm %s1836_s1, 128  ;;  %s1285_s30 = scalar_lea.hbm %s1882_s5, 256 }
 0x301   : > { %p1282_p0 = scmp.ne.s32.totalorder %s1836_s1, %s1281_s22  ;;  %p1286_p4 = scmp.lt.u32.totalorder %s1836_s1, %s1882_s5 }
 0x302   : > { %p1287_p6 = scmp.lt.u32.totalorder %s1285_s30, %s1281_s22  ;;  %p1289_p5 = scmp.lt.u32.totalorder %s1281_s22, %s1836_s1 }
 0x303   : > { %p1283_p1 = pnand %p1282_p0, %p1430_p3 }
 0x304   : > { %p1288_p7 = por %p1287_p6, %p1286_p4 }
 0x305   : > { %p1284_p2 = pneg %p1283_p1 }
 0x306   : > { %p1290_p8 = por %p1289_p5, %p1288_p7 }
 0x308   : > { %p1291_p9 = pnand %p1290_p8, %p1284_p2 }
 0x30a   : > { %1294 = shalt.err (!%p1291_p9)
}
 0x30b   : > { %851 = dma.vmem_to_hbm [thread:$0]  (%p1430_p3), %s1838_s29, 128, %s1836_s1, %s674_s10  }
 0x30c PF: > { %p857_p10 = scmp.ge.s32.totalorder %s1337_s12, 1  ;;  %s699_s25 = sand.u32 1, %s1329_s2  }
 0x30d   : > { %p1913_p11 = scmp.ne.s32.totalorder %s1892_s19, 0  ;;  %s700_s15 = scalar_lea.sflag [#allocation11], %s699_s25 }
 0x30f   : > { %p854_p12 = pnand %p857_p10, %p1913_p11 }
 0x311   : > { %1324 = dma.done.wait (!%p854_p12), %s700_s15, 128  }
 0x312   : > { %1326 = vsyncadd (!%p854_p12), %s700_s15, 4294967168  ;;  %s1914_s12 = sld [smem:[#allocation43_spill]]  ;;  %s1915_s0 = sld [smem:[#allocation44_spill]] }
 0x313   : > { %s1916_s2 = smov %s1333_s11 }
 0x318   : > { %p27_p13 = scmp.ge.s32.totalorder %s1914_s12, 3   ;;  %s1917_s11 = smov %s1915_s0 }
 0x31a   :  { %29 = sbr.rel (!%p27_p13) target bundleno = 36 (0x24), region = 158 }
 0x321   :  { %705 = vsyncpa [#allocation11], 1 }
 0x322   :  { %707 = vsyncpa [#allocation11 + $0x1], 1 }
 0x323   :  { %708 = vsyncmov [#allocation5] }
 0x326   :  { %s709_s18 = vpop.sfrf %708 }
 0x327   :  { %p826_p3 = scmp.ne.s32.totalorder %s709_s18, 0 }
 0x329   :  { %713 = shalt.err (%p826_p3)  }
 0x32a   :  { %715 = vsyncmov [#allocation5 + $0x1] }
 0x32d   :  { %s716_s19 = vpop.sfrf %715 }
 0x32e   :  { %p827_p0 = scmp.ne.s32.totalorder %s716_s19, 0 }
 0x330   :  { %720 = shalt.err (%p827_p0)  }
 0x331   :  { %722 = vsyncmov [#allocation5 + $0x2] }
 0x334   :  { %s723_s20 = vpop.sfrf %722 }
 0x335   :  { %p828_p1 = scmp.ne.s32.totalorder %s723_s20, 0 }
 0x337   :  { %727 = shalt.err (%p828_p1)  }

</bundles_post_ra>
